<compile_context>
chip_gen: v7x
topology: tpu7x:2x2x1
jax: 0.10.0
libtpu: 0.0.40
codegen_flags: <defaults>
</compile_context>

<pallas_src>
import jax
import jax.numpy as jnp
from jax import lax
from jax.experimental import pallas as pl
from jax.experimental.pallas import tpu as pltpu

C_IN = 1280          # efficientnet_v2_s backbone output channels
C_LATENT = 16        # default c_latent of the module
BN_EPS = 1e-5        # nn.BatchNorm2d default eps
LANE_CAP = 2048      # max lanes per spatial tile (multiple of 128)


def _make_conv_stats_kernel(bn, tm, hw, ragged):
    """Fused 1x1 conv (channel matmul) + per-step partial BN statistics."""

    def kernel(x_ref, w_ref, y_ref, stats_ref):
        # x_ref:     [bn, C_IN, tm]      native dtype (cast to bf16 here, under the DMA)
        # w_ref:     [C_LATENT, C_IN]    bf16 (tiny, VMEM-resident conv weight)
        # y_ref:     [bn, C_LATENT, tm]  bf16 (lane-dense conv output, NCHW-ordered)
        # stats_ref: [C_LATENT, 2]       f32  (partial sum(y), sum(y^2) for this step)
        w = w_ref[...]
        if ragged:
            start = pl.program_id(1) * tm
            lane = lax.broadcasted_iota(jnp.int32, (1, tm), 1)
            valid = (start + lane) < hw   # mask garbage lanes of the last spatial tile

        s1 = jnp.zeros((C_LATENT, 1), jnp.float32)
        s2 = jnp.zeros((C_LATENT, 1), jnp.float32)
        for b in range(bn):               # bn is small; static unroll, one MXU pass each
            xb = x_ref[b].astype(jnp.bfloat16)                              # [C_IN, tm]
            y = jnp.dot(w, xb, preferred_element_type=jnp.float32)          # f32 accum
            y_ref[b] = y.astype(y_ref.dtype)                                # bf16 store
            ym = jnp.where(valid, y, 0.0) if ragged else y
            s1 = s1 + jnp.sum(ym, axis=1, keepdims=True)
            s2 = s2 + jnp.sum(ym * ym, axis=1, keepdims=True)
        stats_ref[:, 0:1] = s1
        stats_ref[:, 1:2] = s2

    return kernel


def _choose_tiling(n, hw, itemsize):
    """Pick (images/step, lanes/tile, n_tiles, ragged) for occupancy + VMEM budget."""
    if hw > LANE_CAP:
        tm = LANE_CAP                                   # multiple of 128
    elif n == 1 and hw > 128:
        # Split spatially so the grid has >=2 steps (v7x megacore / pipelining).
        tm = ((-(-hw // 2)) + 127) // 128 * 128
    else:
        tm = hw                                          # full-extent lane dim is legal
    n_tiles = -(-hw // tm)
    ragged = (n_tiles * tm != hw)

    # Images per grid step: largest divisor of n whose x block stays <= ~6 MB while
    # keeping >= 4 grid steps when possible (amortize ~0.35us/step, keep pipelining).
    per_image = C_IN * tm * itemsize
    target_bytes = 6 << 20
    bn = 1
    for d in range(1, n + 1):
        if n % d:
            continue
        if d * per_image > target_bytes:
            break
        if (n // d) * n_tiles >= 4 or d == 1:
            bn = d
    return bn, tm, n_tiles, ragged


def efficientnet_encoder_forward(features_nchw, conv_w, bn_gamma, bn_beta):
    """Forward of EfficientNetEncoder.mapper on backbone features [N, 1280, H, W].

    # TODO(synk): the pretrained torchvision efficientnet_v2_s `features` backbone has
    # no clean Pallas translation (frozen checkpointed CNN with hundreds of layers);
    # this implements the module's own compute (mapper conv + BN).
    """
    N, C, H, W = features_nchw.shape
    assert C == C_IN
    hw = H * W
    itemsize = jnp.dtype(features_nchw.dtype).itemsize
    bn, tm, n_tiles, ragged = _choose_tiling(N, hw, itemsize)
    hwp = n_tiles * tm

    # Pure reshape: NCHW is already channel-major with spatial on the lane axis.
    # No HBM transpose, no dtype cast, no padding copy.
    x = features_nchw.reshape(N, C_IN, hw)
    w = conv_w.reshape(C_LATENT, C_IN).astype(jnp.bfloat16)   # 40 KB, VMEM-resident

    kernel = _make_conv_stats_kernel(bn, tm, hw, ragged)
    y, stats = pl.pallas_call(
        kernel,
        out_shape=(
            jax.ShapeDtypeStruct((N, C_LATENT, hwp), jnp.bfloat16),
            jax.ShapeDtypeStruct((N // bn, n_tiles, C_LATENT, 2), jnp.float32),
        ),
        grid=(N // bn, n_tiles),
        in_specs=[
            pl.BlockSpec((bn, C_IN, tm), lambda n, m: (n, 0, m)),
            pl.BlockSpec((C_LATENT, C_IN), lambda n, m: (0, 0)),
        ],
        out_specs=(
            pl.BlockSpec((bn, C_LATENT, tm), lambda n, m: (n, 0, m)),
            pl.BlockSpec(
                (pl.Squeezed(), pl.Squeezed(), C_LATENT, 2),
                lambda n, m: (n, m, 0, 0),
            ),
        ),
        compiler_params=pltpu.CompilerParams(
            dimension_semantics=("parallel", "parallel"),
            vmem_limit_bytes=32 * 1024 * 1024,
        ),
    )(x, w)

    # Fold global training-mode BN statistics (16 channels) in plain JAX.
    count = jnp.float32(N * hw)                          # real element count (masked tail)
    sums = jnp.sum(stats[..., 0], axis=(0, 1))           # [16]
    sumsq = jnp.sum(stats[..., 1], axis=(0, 1))          # [16]
    mean = sums / count
    var = jnp.maximum(sumsq / count - mean * mean, 0.0)  # biased variance
    inv_std = lax.rsqrt(var + BN_EPS)
    g = bn_gamma.astype(jnp.float32)
    b = bn_beta.astype(jnp.float32)
    scale = (g * inv_std).reshape(1, C_LATENT, 1)
    shift = (b - mean * g * inv_std).reshape(1, C_LATENT, 1)
    # TODO(synk): PyTorch training-mode BatchNorm2d also updates running_mean /
    # running_var (unbiased); that module-state side effect is not emitted here.

    # BN apply in plain jnp so XLA fuses it with the slice + final reshape
    # (a dedicated Pallas pass here was per-step-overhead bound).
    y = y if hwp == hw else y[:, :, :hw]
    out = y.astype(jnp.float32) * scale + shift
    return out.reshape(N, C_LATENT, H, W)


def _reference(features_nchw, conv_w, bn_gamma, bn_beta):
    """Pure-JAX reference mirroring the kernel's numeric path (bf16 matmul/f32 accum,
    bf16-stored conv output, stats from the f32 accumulation)."""
    xb = features_nchw.astype(jnp.bfloat16)
    wb = conv_w.reshape(C_LATENT, C_IN).astype(jnp.bfloat16)
    y = jnp.einsum("nchw,oc->nohw", xb, wb, preferred_element_type=jnp.float32)
    mean = jnp.mean(y, axis=(0, 2, 3), keepdims=True)
    var = jnp.mean((y - mean) ** 2, axis=(0, 2, 3), keepdims=True)  # biased
    y_q = y.astype(jnp.bfloat16).astype(jnp.float32)   # kernel stores y as bf16
    g = bn_gamma.reshape(1, C_LATENT, 1, 1)
    b = bn_beta.reshape(1, C_LATENT, 1, 1)
    return (y_q - mean) * lax.rsqrt(var + BN_EPS) * g + b


if __name__ == "__main__":
    key = jax.random.PRNGKey(0)
    k_feat, k_w, k_g, k_b = jax.random.split(key, 4)

    # Small shapes: batch=2, backbone feature map 16x16 with 1280 channels.
    N, H, W = 2, 16, 16
    features = jax.random.normal(k_feat, (N, C_IN, H, W), dtype=jnp.float32)

    # Deterministic synthetic parameters (Conv2d 1x1 weight, BN affine).
    conv_w = 0.02 * jax.random.normal(k_w, (C_LATENT, C_IN, 1, 1), dtype=jnp.float32)
    bn_gamma = 1.0 + 0.1 * jax.random.normal(k_g, (C_LATENT,), dtype=jnp.float32)
    bn_beta = 0.1 * jax.random.normal(k_b, (C_LATENT,), dtype=jnp.float32)

    out = efficientnet_encoder_forward(features, conv_w, bn_gamma, bn_beta)
    out = jax.block_until_ready(out)

    ref = _reference(features, conv_w, bn_gamma, bn_beta)
    assert out.shape == (N, C_LATENT, H, W)
    max_err = float(jnp.max(jnp.abs(out - ref)))
    assert jnp.allclose(out, ref, rtol=2e-3, atol=2e-3), f"mismatch, max_err={max_err}"

    print("KERNEL_OK")
</pallas_src>

<mosaic_0001>
module attributes {stable_mosaic.version = 11 : i64} {
  func.func @kernel(%arg0: i32, %arg1: i32, %arg2: memref<1x1280x256xf32, #tpu.memory_space<vmem>>, %arg3: memref<16x1280xbf16, #tpu.memory_space<vmem>>, %arg4: memref<1x16x256xbf16, #tpu.memory_space<vmem>>, %arg5: memref<1x1x16x2xf32, #tpu.memory_space<vmem>>) attributes {dimension_semantics = [#tpu.dimension_semantics<parallel>, #tpu.dimension_semantics<parallel>], iteration_bounds = array<i64: 2, 1>, scalar_prefetch = 0 : i64, scratch_operands = 0 : i64, tpu.core_type = #tpu.core_type<tc>, window_params = [{transform_indices = @transform_0, window_bounds = array<i64: 1, 1280, 256>}, {pipeline_mode = #tpu.pipeline_mode<synchronous>, transform_indices = @transform_1, window_bounds = array<i64: 16, 1280>}, {transform_indices = @transform_2, window_bounds = array<i64: 1, 16, 256>}, {transform_indices = @transform_3, window_bounds = array<i64: 1, 1, 16, 2>}]} {
    %c0 = arith.constant 0 : index
    %c0_0 = arith.constant 0 : index
    %0 = vector.load %arg3[%c0, %c0_0] : memref<16x1280xbf16, #tpu.memory_space<vmem>>, vector<16x1280xbf16>
    %cst = arith.constant 0.000000e+00 : f32
    %1 = vector.broadcast %cst : f32 to vector<16x1xf32>
    %cst_1 = arith.constant 0.000000e+00 : f32
    %2 = vector.broadcast %cst_1 : f32 to vector<16x1xf32>
    %c0_2 = arith.constant 0 : index
    %c0_3 = arith.constant 0 : index
    %c0_4 = arith.constant 0 : index
    %3 = vector.load %arg2[%c0_2, %c0_3, %c0_4] : memref<1x1280x256xf32, #tpu.memory_space<vmem>>, vector<1x1280x256xf32>
    %4 = vector.shape_cast %3 : vector<1x1280x256xf32> to vector<1280x256xf32>
    %5 = arith.truncf %4 : vector<1280x256xf32> to vector<1280x256xbf16>
    %cst_5 = arith.constant dense<0.000000e+00> : vector<16x256xf32>
    %6 = tpu.matmul %0, %5, %cst_5 {dimension_numbers = #tpu.dot_dimension_numbers<[1], [0], [0], [1], [0, 0, 1, 1], [], []>} : vector<16x1280xbf16>, vector<1280x256xbf16>, vector<16x256xf32> -> vector<16x256xf32>
    %7 = arith.truncf %6 : vector<16x256xf32> to vector<16x256xbf16>
    %c0_6 = arith.constant 0 : index
    %c0_7 = arith.constant 0 : index
    %c0_8 = arith.constant 0 : index
    %8 = vector.load %arg4[%c0_6, %c0_7, %c0_8] : memref<1x16x256xbf16, #tpu.memory_space<vmem>>, vector<1x16x256xbf16>
    %9 = vector.shape_cast %8 : vector<1x16x256xbf16> to vector<16x256xbf16>
    %10 = vector.shape_cast %7 : vector<16x256xbf16> to vector<1x16x256xbf16>
    tpu.vector_store %arg4[%c0_6, %c0_7, %c0_8], %10 {strides = array<i32>} : memref<1x16x256xbf16, #tpu.memory_space<vmem>>, vector<1x16x256xbf16>,
    %cst_9 = arith.constant dense<0.000000e+00> : vector<16xf32>
    %11 = vector.multi_reduction <add>, %6, %cst_9 [1] : vector<16x256xf32> to vector<16xf32>
    %12 = vector.shape_cast %11 : vector<16xf32> to vector<16x1xf32>
    %13 = arith.addf %1, %12 : vector<16x1xf32>
    %14 = arith.mulf %6, %6 : vector<16x256xf32>
    %cst_10 = arith.constant dense<0.000000e+00> : vector<16xf32>
    %15 = vector.multi_reduction <add>, %14, %cst_10 [1] : vector<16x256xf32> to vector<16xf32>
    %16 = vector.shape_cast %15 : vector<16xf32> to vector<16x1xf32>
    %17 = arith.addf %2, %16 : vector<16x1xf32>
    %c0_11 = arith.constant 0 : index
    %c0_12 = arith.constant 0 : index
    %c0_13 = arith.constant 0 : index
    %c0_14 = arith.constant 0 : index
    %18 = vector.load %arg5[%c0_11, %c0_12, %c0_13, %c0_14] : memref<1x1x16x2xf32, #tpu.memory_space<vmem>>, vector<1x1x16x1xf32>
    %19 = vector.shape_cast %18 : vector<1x1x16x1xf32> to vector<16x1xf32>
    %20 = vector.shape_cast %13 : vector<16x1xf32> to vector<1x1x16x1xf32>
    tpu.vector_store %arg5[%c0_11, %c0_12, %c0_13, %c0_14], %20 {strides = array<i32>} : memref<1x1x16x2xf32, #tpu.memory_space<vmem>>, vector<1x1x16x1xf32>,
    %c0_15 = arith.constant 0 : index
    %c0_16 = arith.constant 0 : index
    %c0_17 = arith.constant 0 : index
    %c1 = arith.constant 1 : index
    %21 = vector.load %arg5[%c0_15, %c0_16, %c0_17, %c1] : memref<1x1x16x2xf32, #tpu.memory_space<vmem>>, vector<1x1x16x1xf32>
    %22 = vector.shape_cast %21 : vector<1x1x16x1xf32> to vector<16x1xf32>
    %23 = vector.shape_cast %17 : vector<16x1xf32> to vector<1x1x16x1xf32>
    tpu.vector_store %arg5[%c0_15, %c0_16, %c0_17, %c1], %23 {strides = array<i32>} : memref<1x1x16x2xf32, #tpu.memory_space<vmem>>, vector<1x1x16x1xf32>,
    return
  }
  func.func @transform_0(%arg0: i32, %arg1: i32) -> (i32, i32, i32) {
    %c0_i32 = arith.constant 0 : i32
    %c0_i32_0 = arith.constant 0 : i32
    return %arg0, %c0_i32, %arg1 : i32, i32, i32
  }
  func.func @transform_1(%arg0: i32, %arg1: i32) -> (i32, i32) {
    %c0_i32 = arith.constant 0 : i32
    %c0_i32_0 = arith.constant 0 : i32
    %c0_i32_1 = arith.constant 0 : i32
    return %c0_i32, %c0_i32_0 : i32, i32
  }
  func.func @transform_2(%arg0: i32, %arg1: i32) -> (i32, i32, i32) {
    %c0_i32 = arith.constant 0 : i32
    %c0_i32_0 = arith.constant 0 : i32
    return %arg0, %c0_i32, %arg1 : i32, i32, i32
  }
  func.func @transform_3(%arg0: i32, %arg1: i32) -> (i32, i32, i32, i32) {
    %c0_i32 = arith.constant 0 : i32
    %c0_i32_0 = arith.constant 0 : i32
    %c0_i32_1 = arith.constant 0 : i32
    return %arg0, %arg1, %c0_i32, %c0_i32_0 : i32, i32, i32, i32
  }
}

</mosaic_0001>

<bundles_post_ra>
// kernel: tpu_custom_call.1
= control target key start
LH: loop header
LB: loop body
LE: loop exit
PB: predicated region body
PF: predicated region fallthrough
CT: control target
= control target key end

     0   :  { %9 = vsyncpa [#allocation3], 0  ;;  %s2069_s0 = inlined_call_operand.hbm [shape: f32[2,1280,256], index: 0, kind: input, shape index: {}]   ;;  %s2070_s1 = inlined_call_operand.hbm [shape: bf16[16,1280], index: 1, kind: input, shape index: {}]   ;;  %s2071_s2 = inlined_call_operand.hbm [shape: bf16[2,16,256], index: 2, kind: output, shape index: {0}]   ;;  %s2072_s3 = inlined_call_operand.vmem [shape: f32[2,1,16,2], index: 3, kind: output, shape index: {1}]  }
   0x1   :  { %11 = vsyncpa [#allocation3 + $0x1], 0 }
   0x2   :  { %12 = vsyncpa [#allocation6], 0 }
   0x3   :  { %13 = vsyncpa [#allocation4], 0 }
   0x4   :  { %15 = vsyncpa [#allocation4 + $0x1], 0  ;;  %s1528_s12 = smov 0   ;;  %s1530_s13 = smov 0  }
   0x5   :  { %s1532_s14 = smov 0   ;;  %s1534_s15 = smov 0  }
   0x6   :  { %s1536_s16 = smov 0   ;;  %s1538_s17 = smov 0  }
   0x7 LB: > { %s1208_s18 = sadd.s32 4294967295, %s1497_s17   ;;  %s1209_s19 = sadd.s32 4294967294, %s1497_s17   ;;  %s1497_s17 = sphi %s1538_s17, %s21_s17   ;;  %s1493_s16 = sphi %s1536_s16, %s2095_s16   ;;  %s1489_s15 = sphi %s1534_s15, %s2094_s15   ;;  %s1485_s14 = sphi %s1532_s14, %s2093_s14   ;;  %s1481_s13 = sphi %s1530_s13, %s2092_s13   ;;  %s1477_s12 = sphi %s1528_s12, %s2091_s12  }
   0x8   : > { %p55_p0 = scmp.ne.s32.totalorder %s1481_s13, %s1477_s12  ;;  %p1562_p1 = scmp.eq.s32.totalorder %s1208_s18, 0 }
   0x9   : > { %p1566_p2 = scmp.eq.s32.totalorder %s1208_s18, 1  ;;  %p108_p3 = scmp.eq.s32.totalorder %s1209_s19, 1 }
   0xa   : > { %s2077_s20 = scalar_select %p1562_p1, 1, 0 }
   0xb   : > { %s2078_s21 = scalar_select %p1566_p2, 1, 0 }
   0xc   : > { %p1572_p4 = por %p1562_p1, %p55_p0  ;;  %p1210_p5 = scmp.ge.s32.totalorder %s1497_s17, 1 }
   0xd   : > { %p1577_p6 = por %p108_p3, %p55_p0  ;;  %p143_p7 = scmp.lt.s32.totalorder %s1497_s17, 3 }
   0xe   : > { %s2079_s22 = scalar_select %p1572_p4, 1, 0 }
   0xf   : > { %s2080_s23 = scalar_select %p1577_p6, 1, 0 }
  0x10   : > { %p1582_p8 = pnand %p1210_p5, %p143_p7  ;;  %s1499_s25 = smov [#allocation5]  }
  0x11   : > { %s155_s26 = sshll.u32 %s1499_s25, 4  ;;  %s33_s28 = sadd.s32 1, %s1493_s16  ;;  %s156_s26 = int_to_ptr.vmem [resolvable:$true] %s155_s26 }
  0x12   : > { %s2081_s24 = scalar_select %p1582_p8, 1, 0 }
  0x13   : > { %p1267_p9 = pneg %p1582_p8  ;;  %s1353_s4 = scalar_lea.hbm %s2070_s1, 1280 }
  0x14   : > { %p1354_p12 = scmp.ne.s32.totalorder %s2070_s1, %s1353_s4  ;;  %p1360_p5 = scmp.lt.u32.totalorder %s1353_s4, %s2070_s1 }
  0x15   : > { %p1591_p11 = pnand %p1267_p9, %p1562_p1 }
  0x17   : > { %p1355_p13 = pneg %p1591_p11 }
  0x19   : > { %p1356_p0 = pnand %p1355_p13, %p1354_p12 }
  0x1b   : > { %p1357_p3 = pneg %p1356_p0 }
  0x1d   : > { %p1362_p7 = pnand %p1360_p5, %p1357_p3 }
  0x1f   : > { %1365 = shalt.err (!%p1362_p7)
}
  0x20   : > { %s1366_s9 = scalar_lea.vmem %s156_s26, 1280  ;;  %p1374_p1 = scmp.lt.s32.totalorder %s156_s26, %s156_s26 }
  0x21   : > { %p1367_p9 = scmp.ne.s32.totalorder %s156_s26, %s1366_s9  ;;  %p1375_p4 = scmp.lt.s32.totalorder %s1366_s9, %s1366_s9 }
  0x23   : > { %p1369_p10 = pnand %p1367_p9, %p1355_p13  ;;  %p1376_p8 = por %p1375_p4, %p1374_p1 }
  0x25   : > { %p1370_p6 = pneg %p1369_p10 }
  0x27   : > { %p1377_p2 = pnand %p1376_p8, %p1370_p6 }
  0x29   : > { %1380 = shalt.err (!%p1377_p2)
}
  0x2a   : > { %s1500_s10 = smov 640   ;;  %s1501_s11 = smov 40  }
  0x2b   : > { %1270 = dma.hbm_to_vmem [thread:$0]  (!%p1591_p11), %s2070_s1, 1280, %s156_s26, [#allocation6], %s1500_s10, %s1500_s10, %s1501_s11  }
  0x2c   : > { %p35_p1 = scmp.ge.s32.totalorder %s33_s28, 2  ;;  %s42_s25 = sadd.s32 1, %s1485_s14 }
  0x2d   : > { %p49_p2 = scmp.ne.s32.totalorder %s1485_s14, %s1481_s13  ;;  %p50_p4 = scmp.eq.s32.totalorder %s1497_s17, 0 }
  0x2e   : > { %s2097_s28 = smov (%p35_p1, %s33_s28), 0  ;;  %p2083_p8 = scmp.ne.s32.totalorder %s2078_s21, 0 }
  0x2f   : > { %p51_p6 = por %p50_p4, %p49_p2  ;;  %s37_s30 = ssub.s32 %s1493_s16, %s2097_s28 }
  0x30   : > { %p1620_p10 = por %p2083_p8, %p49_p2  ;;  %p1280_p12 = scmp.lt.s32.totalorder %s1497_s17, 2 }
  0x31   : > { %p40_p13 = scmp.eq.s32.totalorder %s37_s30, 0  ;;  %s169_s27 = sand.u32 1, %s1485_s14  }
  0x32   : > { %s1256_s4 = smul.u32 2560, %s169_s27  ;;  %p1632_p11 = pnand %p1280_p12, %p51_p6 }
  0x33   : > { %s1629_s5 = scalar_select %p40_p13, %s1485_s14, %s42_s25  }
  0x34   : > { %s1257_s26 = smul.u32 40960, %s1493_s16  ;;  %s173_s6 = scalar_lea.vmem [#allocation2], %s1256_s4 }
  0x35   : > { %s182_s7 = sshll.u32 %s173_s6, 4  ;;  %s1643_s11 = scalar_lea.sflag [#allocation3], %s169_s27  ;;  %s1641_s7 = int_to_ptr.vmem [resolvable:$true] %s182_s7 }
  0x36   : > { %s1639_s10 = scalar_lea.hbm %s2069_s0, %s1257_s26  ;;  %p1383_p3 = pneg %p1632_p11 }
  0x37   : > { %s1381_s18 = scalar_lea.hbm %s1639_s10, 40960  ;;  %s1386_s30 = scalar_lea.hbm %s2069_s0, 81920 }
  0x38   : > { %p1382_p0 = scmp.ne.s32.totalorder %s1639_s10, %s1381_s18  ;;  %p1387_p9 = scmp.lt.u32.totalorder %s1639_s10, %s2069_s0 }
  0x39   : > { %p1388_p1 = scmp.lt.u32.totalorder %s1386_s30, %s1381_s18  ;;  %p1390_p4 = scmp.lt.u32.totalorder %s1381_s18, %s1639_s10 }
  0x3a   : > { %p1384_p5 = pnand %p1383_p3, %p1382_p0 }
  0x3b   : > { %p1389_p2 = por %p1388_p1, %p1387_p9 }
  0x3c   : > { %p1385_p7 = pneg %p1384_p5 }
  0x3d   : > { %p1391_p6 = por %p1390_p4, %p1389_p2 }
  0x3f   : > { %p1392_p8 = pnand %p1391_p6, %p1385_p7 }
  0x41   : > { %1395 = shalt.err (!%p1392_p8)
}
  0x42   : > { %s1396_s27 = scalar_lea.vmem %s1641_s7, 40960  ;;  %s1502_s6 = smov [#allocation2]  }
  0x43   : > { %p1397_p12 = scmp.ne.s32.totalorder %s1641_s7, %s1396_s27  ;;  %s1401_s9 = sshll.u32 %s1502_s6, 4  ;;  %s1402_s9 = int_to_ptr.vmem [resolvable:$false] %s1401_s9 }
  0x44   : > { %s1403_s21 = scalar_lea.vmem %s1402_s9, 81920  ;;  %p1404_p5 = scmp.lt.s32.totalorder %s1641_s7, %s1402_s9 }
  0x45   : > { %p1399_p13 = pnand %p1397_p12, %p1383_p3  ;;  %p1405_p9 = scmp.lt.s32.totalorder %s1403_s21, %s1396_s27 }
  0x47   : > { %p1400_p0 = pneg %p1399_p13  ;;  %p1406_p1 = por %p1405_p9, %p1404_p5 }
  0x49   : > { %p1407_p2 = pnand %p1406_p1, %p1400_p0 }
  0x4b   : > { %1410 = shalt.err (!%p1407_p2)
}
  0x4c   : > { %s1503_s18 = smov 256   ;;  %s1504_s19 = smov 16  }
  0x4d   : > { %1274 = dma.hbm_to_vmem [thread:$0]  (!%p1632_p11), %s1639_s10, 40960, %s1641_s7, %s1643_s11, %s1503_s18, %s1503_s18, %s1504_s19  }
  0x4e   : > { %p2086_p3 = scmp.ne.s32.totalorder %s2081_s24, 0 }
  0x4f   : > { %s1674_s25 = sand.u32 (!%p2086_p3), 1, %s1481_s13   ;;  %p2087_p7 = scmp.ne.s32.totalorder (!%p2086_p3), %s2079_s22, 0 }
  0x50   : > { %194 = sbr.rel (%p2086_p3) target bundleno = 654 (0x28e), region = 28  ;;  %s197_s4 = scalar_lea.sflag (!%p2086_p3), [#allocation3], %s1674_s25 }
  0x51   : > { %s1258_s30 = smul.u32 (!%p2086_p3), 2560, %s1674_s25 }
  0x53   : > { %s1678_s26 = scalar_lea.vmem (!%p2086_p3), [#allocation2], %s1258_s30 }
  0x57   : > { %1464 = dma.done.wait (%p2087_p7), %s197_s4, 40960  }
  0x58   : > { %1466 = vsyncadd (%p2087_p7), %s197_s4, 4294926336  ;;  %p2088_p11 = scmp.ne.s32.totalorder %s2077_s20, 0 }
  0x5a   : > { %1468 = dma.done.wait (%p2088_p11), [#allocation6], 1280  }
  0x5b   : > { %1470 = vsyncadd (%p2088_p11), [#allocation6], 4294966016  ;;  %v258_v0 = vld [vmem:[%s1678_s26 + $0x8] sm:$0xff]  ;;  %v260_v1 = vld [vmem:[%s1678_s26 + $0x18] sm:$0xff]  ;;  %s1216_s20 = sshll.u32 %s1674_s25, 4  ;;  %s1239_s7 = sshll.u32 %s1489_s15, 8 }
  0x5c   : > { %v386_v2 = vld [vmem:[%s1678_s26 + $0x408] sm:$0xff]  ;;  %v578_v3 = vpack.c.bf16 %v260_v1, %v258_v0  ;;  %v388_v4 = vld [vmem:[%s1678_s26 + $0x418] sm:$0xff]  ;;  %v257_v5 = vld [vmem:[%s1678_s26] sm:$0xff]  ;;  %s224_s22 = scalar_lea.vmem [#allocation7], %s1216_s20  ;;  %s2015_s11 = scalar_lea.hbm %s2071_s2, %s1239_s7 }
  0x5d   : > { %v259_v6 = vld [vmem:[%s1678_s26 + $0x10] sm:$0xff]  ;;  %v642_v7 = vpack.c.bf16 %v388_v4, %v386_v2  ;;  %v385_v9 = vld [vmem:[%s1678_s26 + $0x400] sm:$0xff]  ;;  %v262_v11 = vld [vmem:[%s1678_s26 + $0x28] sm:$0xff]  ;;  %s1067_s24 = sshll.u32 %s224_s22, 4  ;;  %s1043_s27 = scalar_lea.sflag [#allocation4], %s1674_s25  ;;  %s2009_s24 = int_to_ptr.vmem [resolvable:$true] %s1067_s24 }
  0x5e   : > { %v577_v8 = vpack.c.bf16 %v259_v6, %v257_v5  ;;  %v387_v10 = vld [vmem:[%s1678_s26 + $0x410] sm:$0xff]  ;;  %787 = vmatprep.subr.bf16.mxu1 %v578_v3  ;;  %v264_v13 = vld [vmem:[%s1678_s26 + $0x38] sm:$0xff]  ;;  %v390_v14 = vld [vmem:[%s1678_s26 + $0x428] sm:$0xff]  ;;  %s1411_s6 = scalar_lea.vmem %s2009_s24, 256  ;;  %s1505_s9 = smov [#allocation7]  }
  0x5f   : > { %v641_v12 = vpack.c.bf16 %v387_v10, %v385_v9  ;;  %v392_v15 = vld [vmem:[%s1678_s26 + $0x438] sm:$0xff]  ;;  %873 = vmatprep.subr.bf16.mxu0 %v642_v7  ;;  %v580_v16 = vpack.c.bf16 %v264_v13, %v262_v11  ;;  %v261_v18 = vld [vmem:[%s1678_s26 + $0x20] sm:$0xff]  ;;  %v263_v19 = vld [vmem:[%s1678_s26 + $0x30] sm:$0xff]  ;;  %p1412_p4 = scmp.ne.s32.totalorder %s2009_s24, %s1411_s6  ;;  %s1415_s21 = sshll.u32 %s1505_s9, 4  ;;  %s1416_s21 = int_to_ptr.vmem [resolvable:$false] %s1415_s21 }
  0x60   : > { %788 = vmatpush1.bf16.msra.mxu1 %v577_v8  ;;  %v644_v17 = vpack.c.bf16 %v392_v15, %v390_v14  ;;  %v389_v20 = vld [vmem:[%s1678_s26 + $0x420] sm:$0xff]  ;;  %v579_v21 = vpack.c.bf16 %v263_v19, %v261_v18  ;;  %v391_v22 = vld [vmem:[%s1678_s26 + $0x430] sm:$0xff]  ;;  %v266_v23 = vld [vmem:[%s1678_s26 + $0x48] sm:$0xff]  ;;  %s1417_s18 = scalar_lea.vmem %s1416_s21, 512  ;;  %p1418_p12 = scmp.lt.s32.totalorder %s2009_s24, %s1416_s21 }
  0x61   : > { %874 = vmatpush1.bf16.msra.mxu0 %v641_v12  ;;  %v268_v24 = vld [vmem:[%s1678_s26 + $0x58] sm:$0xff]  ;;  %789 = vmatprep.subr.bf16.mxu1 %v580_v16  ;;  %v643_v25 = vpack.c.bf16 %v391_v22, %v389_v20  ;;  %v394_v27 = vld [vmem:[%s1678_s26 + $0x448] sm:$0xff]  ;;  %v265_v29 = vld [vmem:[%s1678_s26 + $0x40] sm:$0xff]  ;;  %p1413_p6 = pnand %p1412_p4, %p1620_p10  ;;  %p1419_p13 = scmp.lt.s32.totalorder %s1417_s18, %s1411_s6 }
  0x62   : > { %875 = vmatprep.subr.bf16.mxu0 %v644_v17  ;;  %v582_v26 = vpack.c.bf16 %v268_v24, %v266_v23  ;;  %v396_v28 = vld [vmem:[%s1678_s26 + $0x458] sm:$0xff]  ;;  %v267_v31 = vld [vmem:[%s1678_s26 + $0x50] sm:$0xff]  ;;  %v393_v32 = vld [vmem:[%s1678_s26 + $0x440] sm:$0xff] }
  0x63   : > { %v646_v30 = vpack.c.bf16 %v396_v28, %v394_v27  ;;  %v395_v33 = vld [vmem:[%s1678_s26 + $0x450] sm:$0xff]  ;;  %v581_v34 = vpack.c.bf16 %v267_v31, %v265_v29  ;;  %v270_v35 = vld [vmem:[%s1678_s26 + $0x68] sm:$0xff]  ;;  %v272_v36 = vld [vmem:[%s1678_s26 + $0x78] sm:$0xff]  ;;  %p1414_p8 = pneg %p1413_p6  ;;  %p1420_p0 = por %p1419_p13, %p1418_p12 }
  0x64   : > { %790 = vmatpush1.bf16.msra.mxu1 %v579_v21  ;;  %v398_v37 = vld [vmem:[%s1678_s26 + $0x468] sm:$0xff]  ;;  %v645_v38 = vpack.c.bf16 %v395_v33, %v393_v32  ;;  %v584_v39 = vpack.c.bf16 %v272_v36, %v270_v35  ;;  %v400_v40 = vld [vmem:[%s1678_s26 + $0x478] sm:$0xff]  ;;  %v269_v41 = vld [vmem:[%s1678_s26 + $0x60] sm:$0xff] }
  0x65   : > { %876 = vmatpush1.bf16.msra.mxu0 %v643_v25  ;;  %791 = vmatprep.subr.bf16.mxu1 %v582_v26  ;;  %v271_v42 = vld [vmem:[%s1678_s26 + $0x70] sm:$0xff]  ;;  %v648_v43 = vpack.c.bf16 %v400_v40, %v398_v37  ;;  %v397_v44 = vld [vmem:[%s1678_s26 + $0x460] sm:$0xff]  ;;  %v274_v46 = vld [vmem:[%s1678_s26 + $0x88] sm:$0xff]  ;;  %p1421_p5 = pnand %p1420_p0, %p1414_p8 }
  0x66   : > { %877 = vmatprep.subr.bf16.mxu0 %v646_v30  ;;  %v399_v45 = vld [vmem:[%s1678_s26 + $0x470] sm:$0xff]  ;;  %v276_v47 = vld [vmem:[%s1678_s26 + $0x98] sm:$0xff]  ;;  %v402_v48 = vld [vmem:[%s1678_s26 + $0x488] sm:$0xff]  ;;  %v583_v50 = vpack.c.bf16 %v271_v42, %v269_v41 }
  0x67   : > { %v404_v49 = vld [vmem:[%s1678_s26 + $0x498] sm:$0xff]  ;;  %v647_v51 = vpack.c.bf16 %v399_v45, %v397_v44  ;;  %v586_v52 = vpack.c.bf16 %v276_v47, %v274_v46  ;;  %v273_v53 = vld [vmem:[%s1678_s26 + $0x80] sm:$0xff]  ;;  %v275_v54 = vld [vmem:[%s1678_s26 + $0x90] sm:$0xff] }
  0x68   : > { %792 = vmatpush1.bf16.msra.mxu1 %v581_v34  ;;  %v401_v55 = vld [vmem:[%s1678_s26 + $0x480] sm:$0xff]  ;;  %v650_v56 = vpack.c.bf16 %v404_v49, %v402_v48  ;;  %v403_v57 = vld [vmem:[%s1678_s26 + $0x490] sm:$0xff]  ;;  %v278_v58 = vld [vmem:[%s1678_s26 + $0xa8] sm:$0xff]  ;;  %v585_v62 = vpack.c.bf16 %v275_v54, %v273_v53 }
  0x69   : > { %878 = vmatpush1.bf16.msra.mxu0 %v645_v38  ;;  %793 = vmatprep.subr.bf16.mxu1 %v584_v39  ;;  %v280_v59 = vld [vmem:[%s1678_s26 + $0xb8] sm:$0xff]  ;;  %v406_v60 = vld [vmem:[%s1678_s26 + $0x4a8] sm:$0xff]  ;;  %v649_v63 = vpack.c.bf16 %v403_v57, %v401_v55  ;;  %v277_v1 = vld [vmem:[%s1678_s26 + $0xa0] sm:$0xff] }
  0x6a   : > { %879 = vmatprep.subr.bf16.mxu0 %v648_v43  ;;  %v408_v61 = vld [vmem:[%s1678_s26 + $0x4b8] sm:$0xff]  ;;  %v588_v0 = vpack.c.bf16 %v280_v59, %v278_v58  ;;  %v279_v2 = vld [vmem:[%s1678_s26 + $0xb0] sm:$0xff]  ;;  %v405_v3 = vld [vmem:[%s1678_s26 + $0x4a0] sm:$0xff] }
  0x6b   : > { %v652_v4 = vpack.c.bf16 %v408_v61, %v406_v60  ;;  %v407_v5 = vld [vmem:[%s1678_s26 + $0x4b0] sm:$0xff]  ;;  %v282_v6 = vld [vmem:[%s1678_s26 + $0xc8] sm:$0xff]  ;;  %v284_v7 = vld [vmem:[%s1678_s26 + $0xd8] sm:$0xff]  ;;  %v587_v10 = vpack.c.bf16 %v279_v2, %v277_v1 }
  0x6c   : > { %794 = vmatpush1.bf16.msra.mxu1 %v583_v50  ;;  %v410_v8 = vld [vmem:[%s1678_s26 + $0x4c8] sm:$0xff]  ;;  %v412_v9 = vld [vmem:[%s1678_s26 + $0x4d8] sm:$0xff]  ;;  %v651_v11 = vpack.c.bf16 %v407_v5, %v405_v3  ;;  %v590_v12 = vpack.c.bf16 %v284_v7, %v282_v6  ;;  %v281_v13 = vld [vmem:[%s1678_s26 + $0xc0] sm:$0xff] }
  0x6d   : > { %880 = vmatpush1.bf16.msra.mxu0 %v647_v51  ;;  %795 = vmatprep.subr.bf16.mxu1 %v586_v52  ;;  %v283_v14 = vld [vmem:[%s1678_s26 + $0xd0] sm:$0xff]  ;;  %v409_v15 = vld [vmem:[%s1678_s26 + $0x4c0] sm:$0xff]  ;;  %v654_v16 = vpack.c.bf16 %v412_v9, %v410_v8  ;;  %v286_v18 = vld [vmem:[%s1678_s26 + $0xe8] sm:$0xff] }
  0x6e   : > { %881 = vmatprep.subr.bf16.mxu0 %v650_v56  ;;  %v411_v17 = vld [vmem:[%s1678_s26 + $0x4d0] sm:$0xff]  ;;  %v288_v19 = vld [vmem:[%s1678_s26 + $0xf8] sm:$0xff]  ;;  %v414_v20 = vld [vmem:[%s1678_s26 + $0x4e8] sm:$0xff]  ;;  %v589_v22 = vpack.c.bf16 %v283_v14, %v281_v13 }
  0x6f   : > { %v416_v21 = vld [vmem:[%s1678_s26 + $0x4f8] sm:$0xff]  ;;  %v653_v23 = vpack.c.bf16 %v411_v17, %v409_v15  ;;  %v592_v24 = vpack.c.bf16 %v288_v19, %v286_v18  ;;  %v285_v25 = vld [vmem:[%s1678_s26 + $0xe0] sm:$0xff]  ;;  %v287_v26 = vld [vmem:[%s1678_s26 + $0xf0] sm:$0xff] }
  0x70   : > { %796 = vmatpush1.bf16.msra.mxu1 %v585_v62  ;;  %v413_v27 = vld [vmem:[%s1678_s26 + $0x4e0] sm:$0xff]  ;;  %v656_v28 = vpack.c.bf16 %v416_v21, %v414_v20  ;;  %v415_v29 = vld [vmem:[%s1678_s26 + $0x4f0] sm:$0xff]  ;;  %v290_v30 = vld [vmem:[%s1678_s26 + $0x108] sm:$0xff]  ;;  %v591_v34 = vpack.c.bf16 %v287_v26, %v285_v25 }
  0x71   : > { %882 = vmatpush1.bf16.msra.mxu0 %v649_v63  ;;  %797 = vmatprep.subr.bf16.mxu1 %v588_v0  ;;  %v292_v31 = vld [vmem:[%s1678_s26 + $0x118] sm:$0xff]  ;;  %v418_v32 = vld [vmem:[%s1678_s26 + $0x508] sm:$0xff]  ;;  %v655_v35 = vpack.c.bf16 %v415_v29, %v413_v27  ;;  %v289_v37 = vld [vmem:[%s1678_s26 + $0x100] sm:$0xff] }
  0x72   : > { %883 = vmatprep.subr.bf16.mxu0 %v652_v4  ;;  %v420_v33 = vld [vmem:[%s1678_s26 + $0x518] sm:$0xff]  ;;  %v594_v36 = vpack.c.bf16 %v292_v31, %v290_v30  ;;  %v291_v38 = vld [vmem:[%s1678_s26 + $0x110] sm:$0xff]  ;;  %v417_v39 = vld [vmem:[%s1678_s26 + $0x500] sm:$0xff] }
  0x73   : > { %v658_v40 = vpack.c.bf16 %v420_v33, %v418_v32  ;;  %v419_v41 = vld [vmem:[%s1678_s26 + $0x510] sm:$0xff]  ;;  %v294_v42 = vld [vmem:[%s1678_s26 + $0x128] sm:$0xff]  ;;  %v296_v43 = vld [vmem:[%s1678_s26 + $0x138] sm:$0xff]  ;;  %v593_v46 = vpack.c.bf16 %v291_v38, %v289_v37 }
  0x74   : > { %798 = vmatpush1.bf16.msra.mxu1 %v587_v10  ;;  %v422_v44 = vld [vmem:[%s1678_s26 + $0x528] sm:$0xff]  ;;  %v424_v45 = vld [vmem:[%s1678_s26 + $0x538] sm:$0xff]  ;;  %v657_v47 = vpack.c.bf16 %v419_v41, %v417_v39  ;;  %v596_v48 = vpack.c.bf16 %v296_v43, %v294_v42  ;;  %v293_v49 = vld [vmem:[%s1678_s26 + $0x120] sm:$0xff] }
  0x75   : > { %884 = vmatpush1.bf16.msra.mxu0 %v651_v11  ;;  %799 = vmatprep.subr.bf16.mxu1 %v590_v12  ;;  %v295_v50 = vld [vmem:[%s1678_s26 + $0x130] sm:$0xff]  ;;  %v421_v51 = vld [vmem:[%s1678_s26 + $0x520] sm:$0xff]  ;;  %v660_v52 = vpack.c.bf16 %v424_v45, %v422_v44  ;;  %v298_v54 = vld [vmem:[%s1678_s26 + $0x148] sm:$0xff] }
  0x76   : > { %885 = vmatprep.subr.bf16.mxu0 %v654_v16  ;;  %v423_v53 = vld [vmem:[%s1678_s26 + $0x530] sm:$0xff]  ;;  %v300_v55 = vld [vmem:[%s1678_s26 + $0x158] sm:$0xff]  ;;  %v426_v56 = vld [vmem:[%s1678_s26 + $0x548] sm:$0xff]  ;;  %v595_v58 = vpack.c.bf16 %v295_v50, %v293_v49 }
  0x77   : > { %v428_v57 = vld [vmem:[%s1678_s26 + $0x558] sm:$0xff]  ;;  %v659_v59 = vpack.c.bf16 %v423_v53, %v421_v51  ;;  %v598_v60 = vpack.c.bf16 %v300_v55, %v298_v54  ;;  %v297_v61 = vld [vmem:[%s1678_s26 + $0x140] sm:$0xff]  ;;  %v299_v62 = vld [vmem:[%s1678_s26 + $0x150] sm:$0xff] }
  0x78   : > { %800 = vmatpush1.bf16.msra.mxu1 %v589_v22  ;;  %v425_v63 = vld [vmem:[%s1678_s26 + $0x540] sm:$0xff]  ;;  %v662_v0 = vpack.c.bf16 %v428_v57, %v426_v56  ;;  %v427_v1 = vld [vmem:[%s1678_s26 + $0x550] sm:$0xff]  ;;  %v302_v2 = vld [vmem:[%s1678_s26 + $0x168] sm:$0xff]  ;;  %v597_v6 = vpack.c.bf16 %v299_v62, %v297_v61 }
  0x79   : > { %886 = vmatpush1.bf16.msra.mxu0 %v653_v23  ;;  %801 = vmatprep.subr.bf16.mxu1 %v592_v24  ;;  %v304_v3 = vld [vmem:[%s1678_s26 + $0x178] sm:$0xff]  ;;  %v430_v4 = vld [vmem:[%s1678_s26 + $0x568] sm:$0xff]  ;;  %v301_v7 = vld [vmem:[%s1678_s26 + $0x160] sm:$0xff]  ;;  %v661_v9 = vpack.c.bf16 %v427_v1, %v425_v63 }
  0x7a   : > { %887 = vmatprep.subr.bf16.mxu0 %v656_v28  ;;  %v432_v5 = vld [vmem:[%s1678_s26 + $0x578] sm:$0xff]  ;;  %v303_v8 = vld [vmem:[%s1678_s26 + $0x170] sm:$0xff]  ;;  %v600_v10 = vpack.c.bf16 %v304_v3, %v302_v2  ;;  %v429_v11 = vld [vmem:[%s1678_s26 + $0x560] sm:$0xff] }
  0x7b   : > { %v431_v12 = vld [vmem:[%s1678_s26 + $0x570] sm:$0xff]  ;;  %v306_v13 = vld [vmem:[%s1678_s26 + $0x188] sm:$0xff]  ;;  %v664_v14 = vpack.c.bf16 %v432_v5, %v430_v4  ;;  %v308_v15 = vld [vmem:[%s1678_s26 + $0x198] sm:$0xff]  ;;  %v599_v19 = vpack.c.bf16 %v303_v8, %v301_v7 }
  0x7c   : > { %802 = vmatpush1.bf16.msra.mxu1 %v591_v34  ;;  %v434_v16 = vld [vmem:[%s1678_s26 + $0x588] sm:$0xff]  ;;  %v436_v17 = vld [vmem:[%s1678_s26 + $0x598] sm:$0xff]  ;;  %v305_v20 = vld [vmem:[%s1678_s26 + $0x180] sm:$0xff]  ;;  %v663_v22 = vpack.c.bf16 %v431_v12, %v429_v11  ;;  %v602_v23 = vpack.c.bf16 %v308_v15, %v306_v13 }
  0x7d   : > { %888 = vmatpush1.bf16.msra.mxu0 %v655_v35  ;;  %803 = vmatprep.subr.bf16.mxu1 %v594_v36  ;;  %v1340_v18 = vld [vmem:[#allocation5 + $0x4] ss:$40 sps:$4 sm:$0xff]   ;;  %v307_v21 = vld [vmem:[%s1678_s26 + $0x190] sm:$0xff]  ;;  %v666_v26 = vpack.c.bf16 %v436_v17, %v434_v16  ;;  %v312_v29 = vld [vmem:[%s1678_s26 + $0x1b8] sm:$0xff] }
  0x7e   : > { %889 = vmatprep.subr.bf16.mxu0 %v658_v40  ;;  %v433_v24 = vld [vmem:[%s1678_s26 + $0x580] sm:$0xff]  ;;  %v1343_v25 = vld [vmem:[#allocation5 + $0x14] ss:$40 sps:$4 sm:$0xff]   ;;  %v310_v28 = vld [vmem:[%s1678_s26 + $0x1a8] sm:$0xff]  ;;  %819 = vmatprep.mubr.bf16.mxu1 %v1340_v18  ;;  %v601_v32 = vpack.c.bf16 %v307_v21, %v305_v20 }
  0x7f   : > { %v435_v27 = vld [vmem:[%s1678_s26 + $0x590] sm:$0xff]  ;;  %v438_v30 = vld [vmem:[%s1678_s26 + $0x5a8] sm:$0xff]  ;;  %v440_v31 = vld [vmem:[%s1678_s26 + $0x5b8] sm:$0xff]  ;;  %905 = vmatprep.mubr.bf16.mxu0 %v1343_v25  ;;  %v604_v34 = vpack.c.bf16 %v312_v29, %v310_v28 }
  0x80   : > { %804 = vmatpush1.bf16.msra.mxu1 %v593_v46  ;;  %v665_v33 = vpack.c.bf16 %v435_v27, %v433_v24  ;;  %v309_v35 = vld [vmem:[%s1678_s26 + $0x1a0] sm:$0xff]  ;;  %v311_v36 = vld [vmem:[%s1678_s26 + $0x1b0] sm:$0xff]  ;;  %v668_v38 = vpack.c.bf16 %v440_v31, %v438_v30  ;;  %v314_v40 = vld [vmem:[%s1678_s26 + $0x1c8] sm:$0xff] }
  0x81   : > { %890 = vmatpush1.bf16.msra.mxu0 %v657_v47  ;;  %805 = vmatprep.subr.bf16.mxu1 %v596_v48  ;;  %v437_v37 = vld [vmem:[%s1678_s26 + $0x5a0] sm:$0xff]  ;;  %v439_v39 = vld [vmem:[%s1678_s26 + $0x5b0] sm:$0xff]  ;;  %v316_v41 = vld [vmem:[%s1678_s26 + $0x1d8] sm:$0xff]  ;;  %v603_v44 = vpack.c.bf16 %v311_v36, %v309_v35 }
  0x82   : > { %891 = vmatprep.subr.bf16.mxu0 %v660_v52  ;;  %v442_v42 = vld [vmem:[%s1678_s26 + $0x5c8] sm:$0xff]  ;;  %v444_v43 = vld [vmem:[%s1678_s26 + $0x5d8] sm:$0xff]  ;;  %v667_v45 = vpack.c.bf16 %v439_v39, %v437_v37  ;;  %v606_v46 = vpack.c.bf16 %v316_v41, %v314_v40  ;;  %v313_v47 = vld [vmem:[%s1678_s26 + $0x1c0] sm:$0xff] }
  0x83   : > { %v315_v48 = vld [vmem:[%s1678_s26 + $0x1d0] sm:$0xff]  ;;  %v441_v49 = vld [vmem:[%s1678_s26 + $0x5c0] sm:$0xff]  ;;  %v670_v50 = vpack.c.bf16 %v444_v43, %v442_v42  ;;  %v318_v52 = vld [vmem:[%s1678_s26 + $0x1e8] sm:$0xff] }
  0x84   : > { %806 = vmatpush1.bf16.msra.mxu1 %v595_v58  ;;  %v443_v51 = vld [vmem:[%s1678_s26 + $0x5d0] sm:$0xff]  ;;  %v320_v53 = vld [vmem:[%s1678_s26 + $0x1f8] sm:$0xff]  ;;  %v446_v54 = vld [vmem:[%s1678_s26 + $0x5e8] sm:$0xff]  ;;  %v605_v56 = vpack.c.bf16 %v315_v48, %v313_v47 }
  0x85   : > { %892 = vmatpush1.bf16.msra.mxu0 %v659_v59  ;;  %807 = vmatprep.subr.bf16.mxu1 %v598_v60  ;;  %v448_v55 = vld [vmem:[%s1678_s26 + $0x5f8] sm:$0xff]  ;;  %v669_v57 = vpack.c.bf16 %v443_v51, %v441_v49  ;;  %v608_v58 = vpack.c.bf16 %v320_v53, %v318_v52  ;;  %v317_v59 = vld [vmem:[%s1678_s26 + $0x1e0] sm:$0xff]  ;;  %v319_v60 = vld [vmem:[%s1678_s26 + $0x1f0] sm:$0xff] }
  0x86   : > { %893 = vmatprep.subr.bf16.mxu0 %v662_v0  ;;  %v445_v61 = vld [vmem:[%s1678_s26 + $0x5e0] sm:$0xff]  ;;  %v672_v62 = vpack.c.bf16 %v448_v55, %v446_v54  ;;  %v447_v63 = vld [vmem:[%s1678_s26 + $0x5f0] sm:$0xff]  ;;  %v322_v0 = vld [vmem:[%s1678_s26 + $0x208] sm:$0xff]  ;;  %v607_v4 = vpack.c.bf16 %v319_v60, %v317_v59 }
  0x87   : > { %v324_v1 = vld [vmem:[%s1678_s26 + $0x218] sm:$0xff]  ;;  %v450_v2 = vld [vmem:[%s1678_s26 + $0x608] sm:$0xff]  ;;  %v671_v5 = vpack.c.bf16 %v447_v63, %v445_v61  ;;  %v321_v7 = vld [vmem:[%s1678_s26 + $0x200] sm:$0xff] }
  0x88   : > { %808 = vmatpush1.bf16.msra.mxu1 %v597_v6  ;;  %v452_v3 = vld [vmem:[%s1678_s26 + $0x618] sm:$0xff]  ;;  %v610_v6 = vpack.c.bf16 %v324_v1, %v322_v0  ;;  %v323_v8 = vld [vmem:[%s1678_s26 + $0x210] sm:$0xff]  ;;  %v326_v12 = vld [vmem:[%s1678_s26 + $0x228] sm:$0xff] }
  0x89   : > { %894 = vmatpush1.bf16.msra.mxu0 %v661_v9  ;;  %809 = vmatprep.subr.bf16.mxu1 %v600_v10  ;;  %v449_v9 = vld [vmem:[%s1678_s26 + $0x600] sm:$0xff]  ;;  %v674_v10 = vpack.c.bf16 %v452_v3, %v450_v2  ;;  %v451_v11 = vld [vmem:[%s1678_s26 + $0x610] sm:$0xff]  ;;  %v328_v13 = vld [vmem:[%s1678_s26 + $0x238] sm:$0xff]  ;;  %v609_v18 = vpack.c.bf16 %v323_v8, %v321_v7 }
  0x8a   : > { %895 = vmatprep.subr.bf16.mxu0 %v664_v14  ;;  %v1338_v14 = vld [vmem:[#allocation5] ss:$40 sps:$4 sm:$0xff]   ;;  %v456_v16 = vld [vmem:[%s1678_s26 + $0x638] sm:$0xff]  ;;  %v612_v20 = vpack.c.bf16 %v328_v13, %v326_v12  ;;  %v455_v25 = vld [vmem:[%s1678_s26 + $0x630] sm:$0xff] }
  0x8b   : > { %v454_v15 = vld [vmem:[%s1678_s26 + $0x628] sm:$0xff]  ;;  %v1341_v17 = vld [vmem:[#allocation5 + $0x10] ss:$40 sps:$4 sm:$0xff]   ;;  %v325_v21 = vld [vmem:[%s1678_s26 + $0x220] sm:$0xff] }
  0x8c   : > { %810 = vmatpush1.bf16.msra.mxu1 %v599_v19  ;;  %v673_v19 = vpack.c.bf16 %v451_v11, %v449_v9  ;;  %v676_v24 = vpack.c.bf16 %v456_v16, %v454_v15  ;;  %v332_v27 = vld [vmem:[%s1678_s26 + $0x258] sm:$0xff]  ;;  %v458_v28 = vld [vmem:[%s1678_s26 + $0x648] sm:$0xff]  ;;  %v457_v35 = vld [vmem:[%s1678_s26 + $0x640] sm:$0xff] }
  0x8d   : > { %896 = vmatpush1.bf16.msra.mxu0 %v663_v22  ;;  %811 = vmatprep.subr.bf16.mxu1 %v602_v23  ;;  %v327_v22 = vld [vmem:[%s1678_s26 + $0x230] sm:$0xff]  ;;  %v453_v23 = vld [vmem:[%s1678_s26 + $0x620] sm:$0xff]  ;;  %v460_v29 = vld [vmem:[%s1678_s26 + $0x658] sm:$0xff] }
  0x8e   : > { %897 = vmatprep.subr.bf16.mxu0 %v666_v26  ;;  %v330_v26 = vld [vmem:[%s1678_s26 + $0x248] sm:$0xff]  ;;  %v611_v30 = vpack.c.bf16 %v327_v22, %v325_v21  ;;  %v675_v31 = vpack.c.bf16 %v455_v25, %v453_v23  ;;  %v678_v36 = vpack.c.bf16 %v460_v29, %v458_v28  ;;  %v459_v37 = vld [vmem:[%s1678_s26 + $0x650] sm:$0xff]  ;;  %v336_v39 = vld [vmem:[%s1678_s26 + $0x278] sm:$0xff] }
  0x8f   : > { %v462_v40 = vld [vmem:[%s1678_s26 + $0x668] sm:$0xff]  ;;  %v464_v41 = vld [vmem:[%s1678_s26 + $0x678] sm:$0xff]  ;;  %v677_v43 = vpack.c.bf16 %v459_v37, %v457_v35  ;;  %v461_v47 = vld [vmem:[%s1678_s26 + $0x660] sm:$0xff] }
  0x90   : > { %812 = vmatpush1.bf16.msra.mxu1 %v601_v32  ;;  %v614_v32 = vpack.c.bf16 %v332_v27, %v330_v26  ;;  %v680_v48 = vpack.c.bf16 %v464_v41, %v462_v40  ;;  %v463_v49 = vld [vmem:[%s1678_s26 + $0x670] sm:$0xff]  ;;  %v340_v51 = vld [vmem:[%s1678_s26 + $0x298] sm:$0xff]  ;;  %v466_v52 = vld [vmem:[%s1678_s26 + $0x688] sm:$0xff] }
  0x91   : > { %898 = vmatpush1.bf16.msra.mxu0 %v665_v33  ;;  %813 = vmatprep.subr.bf16.mxu1 %v604_v34  ;;  %v329_v33 = vld [vmem:[%s1678_s26 + $0x240] sm:$0xff]  ;;  %v331_v34 = vld [vmem:[%s1678_s26 + $0x250] sm:$0xff]  ;;  %v468_v53 = vld [vmem:[%s1678_s26 + $0x698] sm:$0xff]  ;;  %v679_v55 = vpack.c.bf16 %v463_v49, %v461_v47 }
  0x92   : > { %899 = vmatprep.subr.bf16.mxu0 %v668_v38  ;;  %v334_v38 = vld [vmem:[%s1678_s26 + $0x268] sm:$0xff]  ;;  %v613_v42 = vpack.c.bf16 %v331_v34, %v329_v33  ;;  %v465_v59 = vld [vmem:[%s1678_s26 + $0x680] sm:$0xff]  ;;  %v682_v60 = vpack.c.bf16 %v468_v53, %v466_v52  ;;  %v467_v61 = vld [vmem:[%s1678_s26 + $0x690] sm:$0xff] }
  0x93   : > { %v344_v63 = vld [vmem:[%s1678_s26 + $0x2b8] sm:$0xff]  ;;  %v470_v0 = vld [vmem:[%s1678_s26 + $0x6a8] sm:$0xff]  ;;  %v681_v3 = vpack.c.bf16 %v467_v61, %v465_v59  ;;  %v469_v7 = vld [vmem:[%s1678_s26 + $0x6a0] sm:$0xff] }
  0x94   : > { %814 = vmatpush1.bf16.msra.mxu1 %v603_v44  ;;  %v616_v44 = vpack.c.bf16 %v336_v39, %v334_v38  ;;  %v472_v1 = vld [vmem:[%s1678_s26 + $0x6b8] sm:$0xff]  ;;  %v471_v9 = vld [vmem:[%s1678_s26 + $0x6b0] sm:$0xff]  ;;  %v474_v12 = vld [vmem:[%s1678_s26 + $0x6c8] sm:$0xff] }
  0x95   : > { %900 = vmatpush1.bf16.msra.mxu0 %v667_v45  ;;  %815 = vmatprep.subr.bf16.mxu1 %v606_v46  ;;  %v333_v45 = vld [vmem:[%s1678_s26 + $0x260] sm:$0xff]  ;;  %v335_v46 = vld [vmem:[%s1678_s26 + $0x270] sm:$0xff]  ;;  %v684_v8 = vpack.c.bf16 %v472_v1, %v470_v0  ;;  %v348_v11 = vld [vmem:[%s1678_s26 + $0x2d8] sm:$0xff]  ;;  %v683_v16 = vpack.c.bf16 %v471_v9, %v469_v7 }
  0x96   : > { %901 = vmatprep.subr.bf16.mxu0 %v670_v50  ;;  %v338_v50 = vld [vmem:[%s1678_s26 + $0x288] sm:$0xff]  ;;  %v615_v54 = vpack.c.bf16 %v335_v46, %v333_v45  ;;  %v476_v13 = vld [vmem:[%s1678_s26 + $0x6d8] sm:$0xff]  ;;  %v345_v15 = vld [vmem:[%s1678_s26 + $0x2c0] sm:$0xff] }
  0x97   : > { %v686_v21 = vpack.c.bf16 %v476_v13, %v474_v12  ;;  %v350_v22 = vld [vmem:[%s1678_s26 + $0x2e8] sm:$0xff]  ;;  %v352_v23 = vld [vmem:[%s1678_s26 + $0x2f8] sm:$0xff]  ;;  %v349_v26 = vld [vmem:[%s1678_s26 + $0x2e0] sm:$0xff] }
  0x98   : > { %816 = vmatpush1.bf16.msra.mxu1 %v605_v56  ;;  %v618_v56 = vpack.c.bf16 %v340_v51, %v338_v50  ;;  %v480_v25 = vld [vmem:[%s1678_s26 + $0x6f8] sm:$0xff]  ;;  %v351_v27 = vld [vmem:[%s1678_s26 + $0x2f0] sm:$0xff]  ;;  %v477_v29 = vld [vmem:[%s1678_s26 + $0x6e0] sm:$0xff] }
  0x99   : > { %902 = vmatpush1.bf16.msra.mxu0 %v669_v57  ;;  %817 = vmatprep.subr.bf16.mxu1 %v608_v58  ;;  %v337_v57 = vld [vmem:[%s1678_s26 + $0x280] sm:$0xff]  ;;  %v339_v58 = vld [vmem:[%s1678_s26 + $0x290] sm:$0xff]  ;;  %v354_v35 = vld [vmem:[%s1678_s26 + $0x308] sm:$0xff]  ;;  %v623_v40 = vpack.c.bf16 %v351_v27, %v349_v26 }
  0x9a   : > { %903 = vmatprep.subr.bf16.mxu0 %v672_v62  ;;  %v342_v62 = vld [vmem:[%s1678_s26 + $0x2a8] sm:$0xff]  ;;  %v617_v2 = vpack.c.bf16 %v339_v58, %v337_v57  ;;  %v1349_v37 = vld [vmem:[#allocation5 + $0x1c] ss:$40 sps:$4 sm:$0xff]   ;;  %v483_v47 = vld [vmem:[%s1678_s26 + $0x710] sm:$0xff] }
  0x9b   : > { %v1346_v33 = vld [vmem:[#allocation5 + $0xc] ss:$40 sps:$4 sm:$0xff]   ;;  %v484_v39 = vld [vmem:[%s1678_s26 + $0x718] sm:$0xff]  ;;  %v481_v45 = vld [vmem:[%s1678_s26 + $0x700] sm:$0xff] }
  0x9c   : > { %818 = vmatpush1.bf16.msra.mxu1 %v607_v4  ;;  %v620_v4 = vpack.c.bf16 %v344_v63, %v342_v62  ;;  %v482_v38 = vld [vmem:[%s1678_s26 + $0x708] sm:$0xff]  ;;  %v360_v49 = vld [vmem:[%s1678_s26 + $0x338] sm:$0xff]  ;;  %v689_v53 = vpack.c.bf16 %v483_v47, %v481_v45  ;;  %v485_v57 = vld [vmem:[%s1678_s26 + $0x720] sm:$0xff] }
  0x9d   : > { %904 = vmatpush1.bf16.msra.mxu0 %v671_v5  ;;  %830 = vmatprep.subr.bf16.mxu1 %v610_v6  ;;  %v341_v5 = vld [vmem:[%s1678_s26 + $0x2a0] sm:$0xff]  ;;  %v343_v6 = vld [vmem:[%s1678_s26 + $0x2b0] sm:$0xff]  ;;  %v690_v46 = vpack.c.bf16 %v484_v39, %v482_v38  ;;  %v486_v50 = vld [vmem:[%s1678_s26 + $0x728] sm:$0xff] }
  0x9e   : > { %916 = vmatprep.subr.bf16.mxu0 %v674_v10  ;;  %v346_v10 = vld [vmem:[%s1678_s26 + $0x2c8] sm:$0xff]  ;;  %v488_v51 = vld [vmem:[%s1678_s26 + $0x738] sm:$0xff]  ;;  %v487_v59 = vld [vmem:[%s1678_s26 + $0x730] sm:$0xff] }
  0x9f   : > { %820 = vmatmul.mubr.bf16.vlgmr.msra.gmra.mrb[0].mxu1 %v1338_v14  ;;  %v619_v14 = vpack.c.bf16 %v343_v6, %v341_v5  ;;  %v692_v58 = vpack.c.bf16 %v488_v51, %v486_v50  ;;  %v364_v61 = vld [vmem:[%s1678_s26 + $0x358] sm:$0xff]  ;;  %v490_v62 = vld [vmem:[%s1678_s26 + $0x748] sm:$0xff]  ;;  %v691_v1 = vpack.c.bf16 %v487_v59, %v485_v57  ;;  %v489_v5 = vld [vmem:[%s1678_s26 + $0x740] sm:$0xff] }
  0xa0   : > { %831 = vmatpush1.bf16.msra.mxu1 %v609_v18  ;;  %906 = vmatmul.mubr.bf16.vlgmr.msra.gmra.mrb[0].mxu0 %v1341_v17  ;;  %v622_v17 = vpack.c.bf16 %v348_v11, %v346_v10  ;;  %v347_v18 = vld [vmem:[%s1678_s26 + $0x2d0] sm:$0xff]  ;;  %v492_v63 = vld [vmem:[%s1678_s26 + $0x758] sm:$0xff]  ;;  %v494_v10 = vld [vmem:[%s1678_s26 + $0x768] sm:$0xff] }
  0xa1   : > { %917 = vmatpush1.bf16.msra.mxu0 %v673_v19  ;;  %832 = vmatprep.subr.bf16.mxu1 %v612_v20  ;;  %v473_v19 = vld [vmem:[%s1678_s26 + $0x6c0] sm:$0xff]  ;;  %v475_v20 = vld [vmem:[%s1678_s26 + $0x6d0] sm:$0xff]  ;;  %v621_v28 = vpack.c.bf16 %v347_v18, %v345_v15  ;;  %v694_v6 = vpack.c.bf16 %v492_v63, %v490_v62  ;;  %v368_v9 = vld [vmem:[%s1678_s26 + $0x378] sm:$0xff] }
  0xa2   : > { %918 = vmatprep.subr.bf16.mxu0 %v676_v24  ;;  %v478_v24 = vld [vmem:[%s1678_s26 + $0x6e8] sm:$0xff]  ;;  %862 = vmatprep.mubr.bf16.mxu1 %v1346_v33  ;;  %v491_v7 = vld [vmem:[%s1678_s26 + $0x750] sm:$0xff]  ;;  %v496_v11 = vld [vmem:[%s1678_s26 + $0x778] sm:$0xff] }
  0xa3   : > { %v688_v34 = vpack.c.bf16 %v480_v25, %v478_v24  ;;  %948 = vmatprep.mubr.bf16.mxu0 %v1349_v37  ;;  %v693_v13 = vpack.c.bf16 %v491_v7, %v489_v5  ;;  %v365_v15 = vld [vmem:[%s1678_s26 + $0x360] sm:$0xff]  ;;  %v696_v18 = vpack.c.bf16 %v496_v11, %v494_v10  ;;  %v376_v33 = vld [vmem:[%s1678_s26 + $0x3b8] sm:$0xff]  ;;  %v515_v10 = vld [vmem:[%s1678_s26 + $0x810] sm:$0xff] }
  0xa4   : > { %833 = vmatpush1.bf16.msra.mxu1 %v611_v30  ;;  %v479_v30 = vld [vmem:[%s1678_s26 + $0x6f0] sm:$0xff]  ;;  %v369_v27 = vld [vmem:[%s1678_s26 + $0x380] sm:$0xff]  ;;  %v380_v45 = vld [vmem:[%s1678_s26 + $0x3d8] sm:$0xff] }
  0xa5   : > { %919 = vmatpush1.bf16.msra.mxu0 %v675_v31  ;;  %834 = vmatprep.subr.bf16.mxu1 %v614_v32  ;;  %v685_v31 = vpack.c.bf16 %v475_v20, %v473_v19  ;;  %v624_v32 = vpack.c.bf16 %v352_v23, %v350_v22  ;;  %v687_v41 = vpack.c.bf16 %v479_v30, %v477_v29  ;;  %v495_v19 = vld [vmem:[%s1678_s26 + $0x770] sm:$0xff]  ;;  %v370_v20 = vld [vmem:[%s1678_s26 + $0x388] sm:$0xff]  ;;  %v500_v23 = vld [vmem:[%s1678_s26 + $0x798] sm:$0xff] }
  0xa6   : > { %920 = vmatprep.subr.bf16.mxu0 %v678_v36  ;;  %v356_v36 = vld [vmem:[%s1678_s26 + $0x318] sm:$0xff]  ;;  %v498_v22 = vld [vmem:[%s1678_s26 + $0x788] sm:$0xff]  ;;  %v497_v29 = vld [vmem:[%s1678_s26 + $0x780] sm:$0xff] }
  0xa7   : > { %v698_v30 = vpack.c.bf16 %v500_v23, %v498_v22  ;;  %v373_v39 = vld [vmem:[%s1678_s26 + $0x3a0] sm:$0xff]  ;;  %v508_v47 = vld [vmem:[%s1678_s26 + $0x7d8] sm:$0xff]  ;;  %v1344_v11 = vld [vmem:[#allocation5 + $0x8] ss:$40 sps:$4 sm:$0xff]  }
  0xa8   : > { %835 = vmatpush1.bf16.msra.mxu1 %v613_v42  ;;  %v626_v42 = vpack.c.bf16 %v356_v36, %v354_v35  ;;  %v504_v35 = vld [vmem:[%s1678_s26 + $0x7b8] sm:$0xff]  ;;  %v377_v51 = vld [vmem:[%s1678_s26 + $0x3c0] sm:$0xff] }
  0xa9   : > { %921 = vmatpush1.bf16.msra.mxu0 %v677_v43  ;;  %836 = vmatprep.subr.bf16.mxu1 %v616_v44  ;;  %v353_v43 = vld [vmem:[%s1678_s26 + $0x300] sm:$0xff]  ;;  %v355_v44 = vld [vmem:[%s1678_s26 + $0x310] sm:$0xff]  ;;  %v384_v57 = vld [vmem:[%s1678_s26 + $0x3f8] sm:$0xff] }
  0xaa   : > { %922 = vmatprep.subr.bf16.mxu0 %v680_v48  ;;  %v358_v48 = vld [vmem:[%s1678_s26 + $0x328] sm:$0xff]  ;;  %v625_v52 = vpack.c.bf16 %v355_v44, %v353_v43  ;;  %v503_v43 = vld [vmem:[%s1678_s26 + $0x7b0] sm:$0xff]  ;;  %v512_v59 = vld [vmem:[%s1678_s26 + $0x7f8] sm:$0xff] }
  0xab   : > { %v378_v44 = vld [vmem:[%s1678_s26 + $0x3c8] sm:$0xff]  ;;  %v381_v63 = vld [vmem:[%s1678_s26 + $0x3e0] sm:$0xff]  ;;  %v516_v5 = vld [vmem:[%s1678_s26 + $0x818] sm:$0xff] }
  0xac   : > { %837 = vmatpush1.bf16.msra.mxu1 %v615_v54  ;;  %v628_v54 = vpack.c.bf16 %v360_v49, %v358_v48  ;;  %v638_v50 = vpack.c.bf16 %v380_v45, %v378_v44  ;;  %v538_v44 = vld [vmem:[%s1678_s26 + $0x8c8] sm:$0xff]  ;;  %v540_v45 = vld [vmem:[%s1678_s26 + $0x8d8] sm:$0xff] }
  0xad   : > { %923 = vmatpush1.bf16.msra.mxu0 %v679_v55  ;;  %838 = vmatprep.subr.bf16.mxu1 %v618_v56  ;;  %v357_v55 = vld [vmem:[%s1678_s26 + $0x320] sm:$0xff]  ;;  %v359_v56 = vld [vmem:[%s1678_s26 + $0x330] sm:$0xff] }
  0xae   : > { %924 = vmatprep.subr.bf16.mxu0 %v682_v60  ;;  %v362_v60 = vld [vmem:[%s1678_s26 + $0x348] sm:$0xff]  ;;  %v627_v0 = vpack.c.bf16 %v359_v56, %v357_v55  ;;  %v507_v55 = vld [vmem:[%s1678_s26 + $0x7d0] sm:$0xff] }
  0xaf   : > { %v382_v56 = vld [vmem:[%s1678_s26 + $0x3e8] sm:$0xff] }
  0xb0   : > { %839 = vmatpush1.bf16.msra.mxu1 %v617_v2  ;;  %v630_v2 = vpack.c.bf16 %v364_v61, %v362_v60  ;;  %v640_v62 = vpack.c.bf16 %v384_v57, %v382_v56  ;;  %v546_v56 = vld [vmem:[%s1678_s26 + $0x908] sm:$0xff]  ;;  %v548_v57 = vld [vmem:[%s1678_s26 + $0x918] sm:$0xff] }
  0xb1   : > { %925 = vmatpush1.bf16.msra.mxu0 %v681_v3  ;;  %840 = vmatprep.subr.bf16.mxu1 %v620_v4  ;;  %v361_v3 = vld [vmem:[%s1678_s26 + $0x340] sm:$0xff]  ;;  %v363_v4 = vld [vmem:[%s1678_s26 + $0x350] sm:$0xff] }
  0xb2   : > { %926 = vmatprep.subr.bf16.mxu0 %v684_v8  ;;  %v366_v8 = vld [vmem:[%s1678_s26 + $0x368] sm:$0xff]  ;;  %v629_v12 = vpack.c.bf16 %v363_v4, %v361_v3  ;;  %v511_v3 = vld [vmem:[%s1678_s26 + $0x7f0] sm:$0xff] }
  0xb3   : > { %v514_v4 = vld [vmem:[%s1678_s26 + $0x808] sm:$0xff] }
  0xb4   : > { %841 = vmatpush1.bf16.msra.mxu1 %v619_v14  ;;  %v632_v14 = vpack.c.bf16 %v368_v9, %v366_v8  ;;  %v706_v8 = vpack.c.bf16 %v516_v5, %v514_v4  ;;  %v513_v9 = vld [vmem:[%s1678_s26 + $0x800] sm:$0xff]  ;;  %v554_v4 = vld [vmem:[%s1678_s26 + $0x948] sm:$0xff]  ;;  %v556_v5 = vld [vmem:[%s1678_s26 + $0x958] sm:$0xff] }
  0xb5   : > { %927 = vmatpush1.bf16.msra.mxu0 %v683_v16  ;;  %842 = vmatprep.subr.bf16.mxu1 %v622_v17  ;;  %v367_v16 = vld [vmem:[%s1678_s26 + $0x370] sm:$0xff]  ;;  %v493_v17 = vld [vmem:[%s1678_s26 + $0x760] sm:$0xff] }
  0xb6   : > { %928 = vmatprep.subr.bf16.mxu0 %v686_v21  ;;  %v372_v21 = vld [vmem:[%s1678_s26 + $0x398] sm:$0xff]  ;;  %v631_v24 = vpack.c.bf16 %v367_v16, %v365_v15  ;;  %v695_v25 = vpack.c.bf16 %v495_v19, %v493_v17  ;;  %v705_v15 = vpack.c.bf16 %v515_v10, %v513_v9  ;;  %v1352_v16 = vld [vmem:[#allocation5 + $0x24] ss:$40 sps:$4 sm:$0xff]   ;;  %v519_v19 = vld [vmem:[%s1678_s26 + $0x830] sm:$0xff] }
  0xb7   : > { %v634_v26 = vpack.c.bf16 %v372_v21, %v370_v20  ;;  %v522_v20 = vld [vmem:[%s1678_s26 + $0x848] sm:$0xff]  ;;  %v524_v21 = vld [vmem:[%s1678_s26 + $0x858] sm:$0xff]  ;;  %v555_v9 = vld [vmem:[%s1678_s26 + $0x950] sm:$0xff] }
  0xb8   : > { %843 = vmatpush1.bf16.msra.mxu1 %v621_v28  ;;  %v371_v28 = vld [vmem:[%s1678_s26 + $0x390] sm:$0xff]  ;;  %v710_v23 = vpack.c.bf16 %v524_v21, %v522_v20  ;;  %v558_v10 = vld [vmem:[%s1678_s26 + $0x968] sm:$0xff]  ;;  %v561_v20 = vld [vmem:[%s1678_s26 + $0x980] sm:$0xff] }
  0xb9   : > { %929 = vmatpush1.bf16.msra.mxu0 %v685_v31  ;;  %844 = vmatprep.subr.bf16.mxu1 %v624_v32  ;;  %v499_v31 = vld [vmem:[%s1678_s26 + $0x790] sm:$0xff]  ;;  %v374_v32 = vld [vmem:[%s1678_s26 + $0x3a8] sm:$0xff]  ;;  %v633_v36 = vpack.c.bf16 %v371_v28, %v369_v27  ;;  %v528_v27 = vld [vmem:[%s1678_s26 + $0x878] sm:$0xff] }
  0xba   : > { %930 = vmatprep.subr.bf16.mxu0 %v688_v34  ;;  %v502_v34 = vld [vmem:[%s1678_s26 + $0x7a8] sm:$0xff]  ;;  %v697_v37 = vpack.c.bf16 %v499_v31, %v497_v29  ;;  %v636_v38 = vpack.c.bf16 %v376_v33, %v374_v32  ;;  %v527_v31 = vld [vmem:[%s1678_s26 + $0x870] sm:$0xff]  ;;  %v532_v33 = vld [vmem:[%s1678_s26 + $0x898] sm:$0xff] }
  0xbb   : > { %v530_v32 = vld [vmem:[%s1678_s26 + $0x888] sm:$0xff]  ;;  %v563_v21 = vld [vmem:[%s1678_s26 + $0x990] sm:$0xff] }
  0xbc   : > { %845 = vmatpush1.bf16.msra.mxu1 %v623_v40  ;;  %v375_v40 = vld [vmem:[%s1678_s26 + $0x3b0] sm:$0xff] }
  0xbd   : > { %931 = vmatpush1.bf16.msra.mxu0 %v687_v41  ;;  %846 = vmatprep.subr.bf16.mxu1 %v626_v42  ;;  %v501_v41 = vld [vmem:[%s1678_s26 + $0x7a0] sm:$0xff]  ;;  %v700_v42 = vpack.c.bf16 %v504_v35, %v502_v34  ;;  %v635_v48 = vpack.c.bf16 %v375_v40, %v373_v39  ;;  %v714_v35 = vpack.c.bf16 %v532_v33, %v530_v32  ;;  %v536_v39 = vld [vmem:[%s1678_s26 + $0x8b8] sm:$0xff]  ;;  %v571_v33 = vld [vmem:[%s1678_s26 + $0x9d0] sm:$0xff] }
  0xbe   : > { %932 = vmatprep.subr.bf16.mxu0 %v690_v46  ;;  %v506_v46 = vld [vmem:[%s1678_s26 + $0x7c8] sm:$0xff]  ;;  %v699_v49 = vpack.c.bf16 %v503_v43, %v501_v41  ;;  %v535_v43 = vld [vmem:[%s1678_s26 + $0x8b0] sm:$0xff]  ;;  %v569_v32 = vld [vmem:[%s1678_s26 + $0x9c0] sm:$0xff] }
  0xc0   : > { %847 = vmatpush1.bf16.msra.mxu1 %v625_v52  ;;  %v379_v52 = vld [vmem:[%s1678_s26 + $0x3d0] sm:$0xff] }
  0xc1   : > { %933 = vmatpush1.bf16.msra.mxu0 %v689_v53  ;;  %848 = vmatprep.subr.bf16.mxu1 %v628_v54  ;;  %v505_v53 = vld [vmem:[%s1678_s26 + $0x7c0] sm:$0xff]  ;;  %v702_v54 = vpack.c.bf16 %v508_v47, %v506_v46  ;;  %v637_v60 = vpack.c.bf16 %v379_v52, %v377_v51  ;;  %v718_v47 = vpack.c.bf16 %v540_v45, %v538_v44  ;;  %v544_v51 = vld [vmem:[%s1678_s26 + $0x8f8] sm:$0xff] }
  0xc2   : > { %934 = vmatprep.subr.bf16.mxu0 %v692_v58  ;;  %v510_v58 = vld [vmem:[%s1678_s26 + $0x7e8] sm:$0xff]  ;;  %v701_v61 = vpack.c.bf16 %v507_v55, %v505_v53  ;;  %v543_v55 = vld [vmem:[%s1678_s26 + $0x8f0] sm:$0xff] }
  0xc4   : > { %849 = vmatpush1.bf16.msra.mxu1 %v627_v0  ;;  %v383_v0 = vld [vmem:[%s1678_s26 + $0x3f0] sm:$0xff] }
  0xc5   : > { %935 = vmatpush1.bf16.msra.mxu0 %v691_v1  ;;  %850 = vmatprep.subr.bf16.mxu1 %v630_v2  ;;  %v704_v1 = vpack.c.bf16 %v512_v59, %v510_v58  ;;  %v509_v2 = vld [vmem:[%s1678_s26 + $0x7e0] sm:$0xff]  ;;  %v722_v59 = vpack.c.bf16 %v548_v57, %v546_v56 }
  0xc6   : > { %936 = vmatprep.subr.bf16.mxu0 %v694_v6  ;;  %v639_v6 = vpack.c.bf16 %v383_v0, %v381_v63  ;;  %v703_v7 = vpack.c.bf16 %v511_v3, %v509_v2  ;;  %v552_v63 = vld [vmem:[%s1678_s26 + $0x938] sm:$0xff]  ;;  %v549_v2 = vld [vmem:[%s1678_s26 + $0x920] sm:$0xff]  ;;  %v551_v3 = vld [vmem:[%s1678_s26 + $0x930] sm:$0xff] }
  0xc8   : > { %851 = vmatpush1.bf16.msra.mxu1 %v629_v12  ;;  %v518_v12 = vld [vmem:[%s1678_s26 + $0x828] sm:$0xff] }
  0xc9   : > { %937 = vmatpush1.bf16.msra.mxu0 %v693_v13  ;;  %852 = vmatprep.subr.bf16.mxu1 %v632_v14  ;;  %v520_v13 = vld [vmem:[%s1678_s26 + $0x838] sm:$0xff] }
  0xca   : > { %938 = vmatprep.subr.bf16.mxu0 %v696_v18  ;;  %v1347_v14 = vld [vmem:[#allocation5 + $0x18] ss:$40 sps:$4 sm:$0xff]   ;;  %v708_v17 = vpack.c.bf16 %v520_v13, %v518_v12 }
  0xcb   : > { %v517_v18 = vld [vmem:[%s1678_s26 + $0x820] sm:$0xff] }
  0xcc   : > { %853 = vmatpush1.bf16.msra.mxu1 %v631_v24  ;;  %v707_v22 = vpack.c.bf16 %v519_v19, %v517_v18  ;;  %v521_v24 = vld [vmem:[%s1678_s26 + $0x840] sm:$0xff] }
  0xcd   : > { %939 = vmatpush1.bf16.msra.mxu0 %v695_v25  ;;  %854 = vmatprep.subr.bf16.mxu1 %v634_v26  ;;  %v523_v25 = vld [vmem:[%s1678_s26 + $0x850] sm:$0xff]  ;;  %v526_v26 = vld [vmem:[%s1678_s26 + $0x868] sm:$0xff] }
  0xce   : > { %940 = vmatprep.subr.bf16.mxu0 %v698_v30  ;;  %v709_v28 = vpack.c.bf16 %v523_v25, %v521_v24  ;;  %v712_v29 = vpack.c.bf16 %v528_v27, %v526_v26  ;;  %v525_v30 = vld [vmem:[%s1678_s26 + $0x860] sm:$0xff]  ;;  %v729_v24 = vpack.c.bf16 %v563_v21, %v561_v20  ;;  %v567_v27 = vld [vmem:[%s1678_s26 + $0x9b0] sm:$0xff] }
  0xcf   : > { %v711_v34 = vpack.c.bf16 %v527_v31, %v525_v30  ;;  %v565_v26 = vld [vmem:[%s1678_s26 + $0x9a0] sm:$0xff] }
  0xd0   : > { %855 = vmatpush1.bf16.msra.mxu1 %v633_v36  ;;  %v529_v36 = vld [vmem:[%s1678_s26 + $0x880] sm:$0xff]  ;;  %v731_v30 = vpack.c.bf16 %v567_v27, %v565_v26 }
  0xd1   : > { %941 = vmatpush1.bf16.msra.mxu0 %v697_v37  ;;  %856 = vmatprep.subr.bf16.mxu1 %v636_v38  ;;  %v531_v37 = vld [vmem:[%s1678_s26 + $0x890] sm:$0xff]  ;;  %v534_v38 = vld [vmem:[%s1678_s26 + $0x8a8] sm:$0xff] }
  0xd2   : > { %942 = vmatprep.subr.bf16.mxu0 %v700_v42  ;;  %v713_v40 = vpack.c.bf16 %v531_v37, %v529_v36  ;;  %v716_v41 = vpack.c.bf16 %v536_v39, %v534_v38  ;;  %v533_v42 = vld [vmem:[%s1678_s26 + $0x8a0] sm:$0xff]  ;;  %v733_v36 = vpack.c.bf16 %v571_v33, %v569_v32  ;;  %v575_v39 = vld [vmem:[%s1678_s26 + $0x9f0] sm:$0xff] }
  0xd3   : > { %v715_v46 = vpack.c.bf16 %v535_v43, %v533_v42  ;;  %v573_v38 = vld [vmem:[%s1678_s26 + $0x9e0] sm:$0xff] }
  0xd4   : > { %857 = vmatpush1.bf16.msra.mxu1 %v635_v48  ;;  %v537_v48 = vld [vmem:[%s1678_s26 + $0x8c0] sm:$0xff] }
  0xd5   : > { %943 = vmatpush1.bf16.msra.mxu0 %v699_v49  ;;  %858 = vmatprep.subr.bf16.mxu1 %v638_v50  ;;  %v539_v49 = vld [vmem:[%s1678_s26 + $0x8d0] sm:$0xff]  ;;  %v542_v50 = vld [vmem:[%s1678_s26 + $0x8e8] sm:$0xff] }
  0xd6   : > { %944 = vmatprep.subr.bf16.mxu0 %v702_v54  ;;  %v717_v52 = vpack.c.bf16 %v539_v49, %v537_v48  ;;  %v720_v53 = vpack.c.bf16 %v544_v51, %v542_v50  ;;  %v541_v54 = vld [vmem:[%s1678_s26 + $0x8e0] sm:$0xff] }
  0xd7   : > { %v719_v58 = vpack.c.bf16 %v543_v55, %v541_v54 }
  0xd8   : > { %859 = vmatpush1.bf16.msra.mxu1 %v637_v60  ;;  %v545_v60 = vld [vmem:[%s1678_s26 + $0x900] sm:$0xff] }
  0xd9   : > { %945 = vmatpush1.bf16.msra.mxu0 %v701_v61  ;;  %860 = vmatprep.subr.bf16.mxu1 %v640_v62  ;;  %v547_v61 = vld [vmem:[%s1678_s26 + $0x910] sm:$0xff]  ;;  %v550_v62 = vld [vmem:[%s1678_s26 + $0x928] sm:$0xff] }
  0xda   : > { %946 = vmatprep.subr.bf16.mxu0 %v704_v1  ;;  %v721_v0 = vpack.c.bf16 %v547_v61, %v545_v60  ;;  %v724_v1 = vpack.c.bf16 %v552_v63, %v550_v62 }
  0xdc   : > { %861 = vmatpush1.bf16.msra.mxu1 %v639_v6  ;;  %v723_v6 = vpack.c.bf16 %v551_v3, %v549_v2 }
  0xdd   : > { %947 = vmatpush1.bf16.msra.mxu0 %v703_v7  ;;  %v726_v7 = vpack.c.bf16 %v556_v5, %v554_v4 }
  0xde   : > { %959 = vmatprep.subr.bf16.mxu0 %v706_v8  ;;  %v553_v8 = vld [vmem:[%s1678_s26 + $0x940] sm:$0xff] }
  0xdf   : > { %863 = vmatmul.mubr.bf16.vlgmr.msra.gmra.mrb[0].mxu1 %v1344_v11  ;;  %v560_v11 = vld [vmem:[%s1678_s26 + $0x978] sm:$0xff]  ;;  %v725_v12 = vpack.c.bf16 %v555_v9, %v553_v8 }
  0xe0   : > { %949 = vmatmul.mubr.bf16.vlgmr.msra.gmra.mrb[0].mxu0 %v1347_v14  ;;  %v728_v13 = vpack.c.bf16 %v560_v11, %v558_v10  ;;  %v557_v14 = vld [vmem:[%s1678_s26 + $0x960] sm:$0xff] }
  0xe1   : > { %960 = vmatpush1.bf16.msra.mxu0 %v705_v15  ;;  %991 = vmatprep.mubr.bf16.mxu0 %v1352_v16  ;;  %v559_v15 = vld [vmem:[%s1678_s26 + $0x970] sm:$0xff]  ;;  %v562_v16 = vld [vmem:[%s1678_s26 + $0x988] sm:$0xff] }
  0xe2   : > { %961 = vmatprep.subr.bf16.mxu0 %v708_v17  ;;  %v564_v17 = vld [vmem:[%s1678_s26 + $0x998] sm:$0xff]  ;;  %v727_v18 = vpack.c.bf16 %v559_v15, %v557_v14 }
  0xe3   : > { %v730_v19 = vpack.c.bf16 %v564_v17, %v562_v16 }
  0xe5   : > { %962 = vmatpush1.bf16.msra.mxu0 %v707_v22  ;;  %v566_v22 = vld [vmem:[%s1678_s26 + $0x9a8] sm:$0xff] }
  0xe6   : > { %963 = vmatprep.subr.bf16.mxu0 %v710_v23  ;;  %v568_v23 = vld [vmem:[%s1678_s26 + $0x9b8] sm:$0xff] }
  0xe7   : > { %v732_v25 = vpack.c.bf16 %v568_v23, %v566_v22 }
  0xe9   : > { %964 = vmatpush1.bf16.msra.mxu0 %v709_v28  ;;  %v570_v28 = vld [vmem:[%s1678_s26 + $0x9c8] sm:$0xff] }
  0xea   : > { %965 = vmatprep.subr.bf16.mxu0 %v712_v29  ;;  %v572_v29 = vld [vmem:[%s1678_s26 + $0x9d8] sm:$0xff] }
  0xeb   : > { %v734_v31 = vpack.c.bf16 %v572_v29, %v570_v28 }
  0xed   : > { %966 = vmatpush1.bf16.msra.mxu0 %v711_v34  ;;  %v574_v34 = vld [vmem:[%s1678_s26 + $0x9e8] sm:$0xff] }
  0xee   : > { %967 = vmatprep.subr.bf16.mxu0 %v714_v35  ;;  %v576_v35 = vld [vmem:[%s1678_s26 + $0x9f8] sm:$0xff] }
  0xef   : > { %v736_v37 = vpack.c.bf16 %v576_v35, %v574_v34 }
  0xf1   : > { %968 = vmatpush1.bf16.msra.mxu0 %v713_v40  ;;  %v735_v40 = vpack.c.bf16 %v575_v39, %v573_v38 }
  0xf2   : > { %969 = vmatprep.subr.bf16.mxu0 %v716_v41  ;;  %v1350_v41 = vld [vmem:[#allocation5 + $0x20] ss:$40 sps:$4 sm:$0xff]  }
  0xf5   : > { %970 = vmatpush1.bf16.msra.mxu0 %v715_v46 }
  0xf6   : > { %971 = vmatprep.subr.bf16.mxu0 %v718_v47 }
  0xf9   : > { %972 = vmatpush1.bf16.msra.mxu0 %v717_v52 }
  0xfa   : > { %973 = vmatprep.subr.bf16.mxu0 %v720_v53 }
  0xfd   : > { %974 = vmatpush1.bf16.msra.mxu0 %v719_v58 }
  0xfe   : > { %975 = vmatprep.subr.bf16.mxu0 %v722_v59 }
 0x101   : > { %976 = vmatpush1.bf16.msra.mxu0 %v721_v0 }
 0x102   : > { %977 = vmatprep.subr.bf16.mxu0 %v724_v1 }
 0x105   : > { %978 = vmatpush1.bf16.msra.mxu0 %v723_v6 }
 0x106   : > { %979 = vmatprep.subr.bf16.mxu0 %v726_v7 }
 0x109   : > { %980 = vmatpush1.bf16.msra.mxu0 %v725_v12 }
 0x10a   : > { %981 = vmatprep.subr.bf16.mxu0 %v728_v13 }
 0x10d   : > { %982 = vmatpush1.bf16.msra.mxu0 %v727_v18 }
 0x10e   : > { %983 = vmatprep.subr.bf16.mxu0 %v730_v19 }
 0x111   : > { %984 = vmatpush1.bf16.msra.mxu0 %v729_v24 }
 0x112   : > { %985 = vmatprep.subr.bf16.mxu0 %v732_v25 }
 0x115   : > { %986 = vmatpush1.bf16.msra.mxu0 %v731_v30 }
 0x116   : > { %987 = vmatprep.subr.bf16.mxu0 %v734_v31 }
 0x119   : > { %988 = vmatpush1.bf16.msra.mxu0 %v733_v36 }
 0x11a   : > { %989 = vmatprep.subr.bf16.mxu0 %v736_v37 }
 0x11d   : > { %990 = vmatpush1.bf16.msra.mxu0 %v735_v40 }
 0x120   : > { %992 = vmatmul.mubr.bf16.vlgmr.msra.gmra.mrb[0].mxu0 %v1350_v41 }
 0x1b2   : > { %v864_v42 = vpop.f32.mrb[0].mxu1 }
 0x1b3   : > { %v866_v43 = vpop.f32.mrb[1].mxu1 }
 0x1b4   : > { %v868_v44 = vpop.f32.mrb[2].mxu1 }
 0x1b5   : > { %v870_v45 = vpop.f32.mrb[3].mxu1 }
 0x1f3   : > { %v993_v46 = vpop.f32.mrb[0].mxu0 }
 0x1f4   : > { %v1240_v47 = vadd.f32 %v993_v46, %v864_v42  ;;  %v995_v48 = vpop.f32.mrb[1].mxu0 }
 0x1f5   : > { %v1241_v49 = vadd.f32 %v995_v48, %v866_v43  ;;  %v997_v50 = vpop.f32.mrb[2].mxu0 }
 0x1f6   : > { %v1242_v51 = vadd.f32 %v997_v50, %v868_v44  ;;  %v999_v52 = vpop.f32.mrb[3].mxu0  ;;  %v1024_v53 = vmul.f32 %v1240_v47, %v1240_v47 }
 0x1f7   : > { %v1237_v54 = vpack.c.bf16 %v1241_v49, %v1240_v47  ;;  %v1243_v55 = vadd.f32 %v999_v52, %v870_v45  ;;  %v1016_v56 = vadd.f32 %v1241_v49, %v1240_v47  ;;  %v1025_v57 = vmul.f32 %v1241_v49, %v1241_v49 }
 0x1f8   : > { %v1026_v58 = vmul.f32 %v1242_v51, %v1242_v51 }
 0x1f9   : > { %1014 = vst [vmem:[%s224_s22] sm:$0xff] %v1237_v54  ;;  %v1238_v59 = vpack.c.bf16 %v1243_v55, %v1242_v51  ;;  %1017 = vadd.xlane.f32.xlu0 %v1016_v56  ;;  %v1028_v60 = vadd.f32 %v1025_v57, %v1024_v53  ;;  %v1019_v61 = vadd.f32 %v1243_v55, %v1242_v51 }
 0x1fa   : > { %v1027_v62 = vmul.f32 %v1243_v55, %v1243_v55 }
 0x1fb   : > { %1015 = vst [vmem:[%s224_s22 + $0x8] sm:$0xff] %v1238_v59  ;;  %1029 = vadd.xlane.f32.xlu1 %v1028_v60 }
 0x1fc   : > { %v1031_v63 = vadd.f32 %v1027_v62, %v1026_v58 }
 0x1fd   : > { %1020 = vadd.xlane.f32.xlu0 %v1019_v61 }
 0x1ff   : > { %1032 = vadd.xlane.f32.xlu1 %v1031_v63 }
 0x200   : > { %1424 = shalt.err (!%p1421_p5)
}
 0x201   : > { %s1425_s19 = scalar_lea.hbm %s2015_s11, 256  ;;  %s1429_s26 = scalar_lea.hbm %s2071_s2, 512 }
 0x202   : > { %p1426_p9 = scmp.ne.s32.totalorder %s2015_s11, %s1425_s19  ;;  %p1430_p3 = scmp.lt.u32.totalorder %s2015_s11, %s2071_s2 }
 0x203   : > { %p1431_p7 = scmp.lt.u32.totalorder %s1429_s26, %s1425_s19  ;;  %p1433_p4 = scmp.lt.u32.totalorder %s1425_s19, %s2015_s11 }
 0x204   : > { %p1427_p1 = pnand %p1426_p9, %p1620_p10 }
 0x205   : > { %p1432_p11 = por %p1431_p7, %p1430_p3 }
 0x206   : > { %p1428_p2 = pneg %p1427_p1 }
 0x207   : > { %p1434_p6 = por %p1433_p4, %p1432_p11 }
 0x209   : > { %p1435_p8 = pnand %p1434_p6, %p1428_p2 }
 0x20b   : > { %1438 = shalt.err (!%p1435_p8)
}
 0x20c   : > { %s1506_s7 = smov 128   ;;  %s1507_s8 = smov 8   ;;  %vm1036_vm0 = vcmask 7168   ;;  %vm1039_vm1 = vcmask 15368  }
 0x20d   : > { %1265 = dma.vmem_to_hbm [thread:$0]  (%p1620_p10), %s2009_s24, 256, %s2015_s11, %s1043_s27, %s1506_s7, %s1506_s7, %s1507_s8  }
 0x20e   : > { %p238_p12 = scmp.lt.s32.totalorder %s1489_s15, 1 }
 0x210   : > { %s2099_s15 = smov (!%p238_p12, %s1489_s15), 1 }
 0x211   : > { %s1236_s10 = sshll.u32 %s2099_s15, 4 }
 0x212   : > { %s246_s21 = scalar_lea.vmem %s2072_s3, %s1236_s10 }
 0x286   : > { %v1018_v0 = vpop.xlane.xlu0 %1017 }
 0x287   : > { %1037 = vst.msk [vmem:[%s246_s21] sm:$0xff] %vm1036_vm0, %v1018_v0 }
 0x288   : > { %v1030_v1 = vpop.xlane.xlu1 %1029 }
 0x289   : > { %1040 = vst.msk [vmem:[%s246_s21] sm:$0xff] %vm1039_vm1, %v1030_v1 }
 0x28a   : > { %v1021_v2 = vpop.xlane.xlu0 %1020 }
 0x28b   : > { %1038 = vst.msk [vmem:[%s246_s21 + $0x8] sm:$0xff] %vm1036_vm0, %v1021_v2 }
 0x28c   : > { %v1033_v3 = vpop.xlane.xlu1 %1032 }
 0x28d   : > { %1041 = vst.msk [vmem:[%s246_s21 + $0x8] sm:$0xff] %vm1039_vm1, %v1033_v3 }
 0x28e PF: > { %s1085_s29 = sand.u32 1, %s1477_s12   ;;  %p2089_p10 = scmp.ne.s32.totalorder %s2080_s23, 0 }
 0x28f   : > { %p2090_p13 = scmp.ge.s32.totalorder %s1497_s17, 2  ;;  %s1086_s15 = scalar_lea.sflag [#allocation4], %s1085_s29 }
 0x291   : > { %p1276_p0 = pnand %p2090_p13, %p2089_p10 }
 0x293   : > { %1472 = dma.done.wait (!%p1276_p0), %s1086_s15, 256  }
 0x294   : > { %1474 = vsyncadd (!%p1276_p0), %s1086_s15, 4294967040  ;;  %s21_s17 = sadd.s32 1, %s1497_s17   ;;  %s2091_s12 = smov %s1481_s13 }
 0x295   : > { %p18_p5 = scmp.ge.s32.totalorder %s21_s17, 4   ;;  %s2092_s13 = smov %s1485_s14 }
 0x296   : > { %s2093_s14 = smov %s1629_s5  ;;  %s2094_s15 = smov %s1493_s16 }
 0x297   : > { %s2095_s16 = smov %s2097_s28  ;;  %20 = sbr.rel (!%p18_p5) target bundleno = 7 (0x7), region = 89 }
 0x29e   :  { %1103 = vsyncpa [#allocation3], 1 }
 0x29f   :  { %1105 = vsyncpa [#allocation3 + $0x1], 1 }
 0x2a0   :  { %1106 = vsyncpa [#allocation6], 1 }
 0x2a1   :  { %1107 = vsyncpa [#allocation4], 1 }
 0x2a2   :  { %1109 = vsyncpa [#allocation4 + $0x1], 1 }

</bundles_post_ra>
